<compile_context>
chip_gen: v6e
topology: v6e:2x2x1
jax: 0.10.0
libtpu: 0.0.40
codegen_flags: <defaults>
</compile_context>

<pallas_src>
import functools

import numpy as np
import jax
import jax.numpy as jnp
from jax import lax
from jax.experimental import pallas as pl
from jax.experimental.pallas import tpu as pltpu


def _decoder_kernel(tf_ref, xgi_ref, embgi_ref, h0_ref, wcat_ref, bhn_ref, bout_ref,
                    out_ref, *, v_true, hidden_dim, gate_stride):
    T, Bp, Vp = out_ref.shape          # time, batch block (sublanes), padded vocab (lanes)
    H = hidden_dim
    G = gate_stride                    # per-gate lane stride (gates live at g*G .. g*G+H)
    OUT_OFF = 3 * G                    # lane offset of the interpret columns inside w_cat

    col = lax.broadcasted_iota(jnp.int32, (Bp, Vp), 1)       # vocab index per lane
    valid = col < v_true                                     # mask off lane padding

    # t = 0: out[:, 0, 0] = 1, everything else 0
    logits0 = (col == 0).astype(jnp.float32)
    out_ref[0] = logits0

    # Small hoisted broadcasts (<= 2 vregs; JAX does not CSE broadcasts).
    bhn_b = jnp.broadcast_to(bhn_ref[...], (Bp, H))          # b_hh_n
    bout_b = jnp.broadcast_to(bout_ref[...], (Bp, Vp))       # interpret bias

    # Recurrence state lives in vregs across the fully unrolled time loop.
    h = h0_ref[...]                                          # [Bp, H]
    prev = logits0                                           # [Bp, Vp]

    # hc = h @ [W_hh_r | W_hh_z | W_hh_n | W_out]: gate part feeds the NEXT
    # step's GRU, tail is the CURRENT h's interpret logits.  Priming dot gives
    # step-1 gates from h0 (its logits part is unused: out[0] is hard-coded).
    hc = jnp.dot(h, wcat_ref[...], preferred_element_type=jnp.float32)

    # T is small and static: fully unroll so the scheduler can overlap MXU
    # dots, EUP sigmoid/tanh and the XLU max across steps.
    for t in range(1, T):
        teacher = tf_ref[t] != 0

        # Greedy path: single XLU max reduction, then a one-hot dot fed
        # straight from VMEM (no long-lived emb_gi vreg hoist).
        masked = jnp.where(valid, prev, -jnp.inf)
        m = jnp.max(masked, axis=1, keepdims=True)
        onehot = (masked == m).astype(jnp.float32)                         # [Bp, Vp]
        gi_greedy = jnp.dot(onehot, embgi_ref[...],
                            preferred_element_type=jnp.float32)            # [Bp, 3G]

        # Teacher path precomputed in the wrapper (x[t] @ W_ih + b_ih + b_hh_{r,z}).
        gi = jnp.where(teacher, xgi_ref[t], gi_greedy)                     # [Bp, 3G]

        # GRUCell (torch gate order r, z, n); every gate slice starts at a
        # 128-lane boundary, so the elementwise math needs no lane relayouts.
        r = jax.nn.sigmoid(gi[:, 0:H] + hc[:, 0:H])
        z = jax.nn.sigmoid(gi[:, G:G + H] + hc[:, G:G + H])
        n = jnp.tanh(gi[:, 2 * G:2 * G + H] + r * (hc[:, 2 * G:2 * G + H] + bhn_b))
        h = (1.0 - z) * n + z * h

        # Single fused h-matmul: gh for step t+1 AND interpret logits for step t.
        hc = jnp.dot(h, wcat_ref[...], preferred_element_type=jnp.float32)
        prev = hc[:, OUT_OFF:OUT_OFF + Vp] + bout_b
        out_ref[t] = prev                                     # lane-dense unmasked store


def decoder_forward(input_seqs, hidden, encoder_outs, lengths,
                    teacher_forcing_ratio, params, tf_key):
    """Mirrors Decoder.forward (attention=False). Returns [B, T, V] logits."""
    emb_table = params["embedding"]                 # [V, E]
    V, E = emb_table.shape
    B, H = hidden.shape
    T = encoder_outs.shape[1]
    del lengths  # torch only uses len(); B already known

    BB = 8                                          # batch block (sublanes)
    B_pad = int(-(-B // BB) * BB)
    V_pad = int(-(-V // 128) * 128)
    G = int(-(-H // 128) * 128)                     # lane stride per GRU gate

    # ---- glue: per-sequence embedding + pad_sequence (batch_first) ----
    # padded positions are EXACT zero embedding vectors (pad_sequence of the
    # already-embedded sequences), matching the torch reference.
    max_in = max(int(s.shape[0]) for s in input_seqs)
    padded_tok = np.zeros((B, max_in), dtype=np.int32)
    tok_mask = np.zeros((B, max_in, 1), dtype=np.float32)
    for i, s in enumerate(input_seqs):
        L = int(s.shape[0])
        padded_tok[i, :L] = np.asarray(s)
        tok_mask[i, :L, 0] = 1.0
    padded_emb = jnp.take(emb_table, jnp.asarray(padded_tok), axis=0) * jnp.asarray(tok_mask)

    # x[t] = padded_input[:, t-1, :] for t >= 1 (time-major, batch padded to 8)
    x = jnp.zeros((T, B_pad, E), jnp.float32)
    n_copy = min(T - 1, max_in)
    x = x.at[1:1 + n_copy, :B].set(jnp.transpose(padded_emb[:, :n_copy, :], (1, 0, 2)))

    # ---- lane-aligned per-gate packing; fold b_hh_r / b_hh_z into the gate
    # inputs (b_hh_n must stay inside the r*(...) term -> added in-kernel). ----
    w_ih, b_ih, b_hh = params["w_ih"], params["b_ih"], params["b_hh"]   # [E,3H],[1,3H],[1,3H]
    w_ih_g = jnp.zeros((E, 3 * G), jnp.float32)
    b_gi_g = jnp.zeros((1, 3 * G), jnp.float32)
    for g in range(3):
        w_ih_g = w_ih_g.at[:, g * G:g * G + H].set(w_ih[:, g * H:(g + 1) * H])
        bias = b_ih[:, g * H:(g + 1) * H]
        if g < 2:                                   # fold recurrent bias for r, z gates
            bias = bias + b_hh[:, g * H:(g + 1) * H]
        b_gi_g = b_gi_g.at[:, g * G:g * G + H].set(bias)

    # Hoist input-path matmuls out of the serial loop:
    #   x_gi[t] = x[t] @ W_ih + biases        (teacher-forcing path)
    #   emb_gi  = E    @ W_ih + biases        (greedy path: onehot @ emb_gi)
    x_gi = jnp.einsum("tbe,eg->tbg", x, w_ih_g) + b_gi_g               # [T, B_pad, 3G]
    emb_gi = jnp.zeros((V_pad, 3 * G), jnp.float32).at[:V].set(emb_table @ w_ih_g + b_gi_g)

    # Fused recurrent weight: one h-matmul per step produces both the GRU gate
    # pre-activations (lane-aligned blocks) and the interpret logits.
    w_cat = jnp.zeros((H, 3 * G + V_pad), jnp.float32)
    for g in range(3):
        w_cat = w_cat.at[:, g * G:g * G + H].set(params["w_hh"][:, g * H:(g + 1) * H])
    w_cat = w_cat.at[:, 3 * G:3 * G + V].set(params["w_out"])

    b_hn = b_hh[:, 2 * H:3 * H]                                         # [1, H]
    b_out = jnp.zeros((1, V_pad), jnp.float32).at[:, :V].set(params["b_out"])

    h0 = jnp.zeros((B_pad, H), jnp.float32).at[:B].set(hidden)

    # per-step teacher-forcing decisions (torch.rand(1) < ratio, one per step)
    u = jax.random.uniform(tf_key, (T,))
    tf_flags = (u < teacher_forcing_ratio).astype(jnp.int32)

    # Batch-parallel grid axis (independent recurrences per 8-row batch block);
    # shards across both TensorCores on v7x once B_pad >= 16, harmless on v5e/v6e.
    grid = (B_pad // BB,)

    grid_spec = pltpu.PrefetchScalarGridSpec(
        num_scalar_prefetch=1,                                    # tf_flags -> SMEM
        grid=grid,
        in_specs=[
            pl.BlockSpec((T, BB, 3 * G), lambda b, tf: (0, b, 0)),      # x_gi
            pl.BlockSpec((V_pad, 3 * G), lambda b, tf: (0, 0)),         # emb_gi
            pl.BlockSpec((BB, H), lambda b, tf: (b, 0)),                # h0
            pl.BlockSpec((H, 3 * G + V_pad), lambda b, tf: (0, 0)),     # w_cat
            pl.BlockSpec((1, H), lambda b, tf: (0, 0)),                 # b_hh_n
            pl.BlockSpec((1, V_pad), lambda b, tf: (0, 0)),             # b_out
        ],
        out_specs=pl.BlockSpec((T, BB, V_pad), lambda b, tf: (0, b, 0)),
    )

    out_tbv = pl.pallas_call(
        functools.partial(_decoder_kernel, v_true=V, hidden_dim=H, gate_stride=G),
        out_shape=jax.ShapeDtypeStruct((T, B_pad, V_pad), jnp.float32),
        grid_spec=grid_spec,
        compiler_params=pltpu.CompilerParams(dimension_semantics=("parallel",)),
    )(tf_flags, x_gi, emb_gi, h0, w_cat, b_hn, b_out)

    # slice off batch/lane padding and return the PyTorch layout [B, T, V]
    return jnp.transpose(out_tbv[:, :B, :V], (1, 0, 2))


if __name__ == "__main__":
    key = jax.random.PRNGKey(0)
    ks = jax.random.split(key, 12)

    B = 2              # batch
    E = 16             # embedding dim
    H = 32             # decoder_hidden
    V = 32             # vocab_size
    T = 8              # max_seq_len (= encoder_outs.shape[1])
    enc_hidden = 8     # encoder_hidden (unused when attention=False)

    scale = 0.1
    params = {
        "embedding": jax.random.normal(ks[0], (V, E), jnp.float32) * scale,
        # torch GRUCell stores weight_ih [3H, E]; we keep the transpose [E, 3H]
        "w_ih": jax.random.normal(ks[1], (E, 3 * H), jnp.float32) * scale,
        "w_hh": jax.random.normal(ks[2], (H, 3 * H), jnp.float32) * scale,
        "b_ih": jax.random.normal(ks[3], (1, 3 * H), jnp.float32) * scale,
        "b_hh": jax.random.normal(ks[4], (1, 3 * H), jnp.float32) * scale,
        # torch Linear stores weight [V, H]; we keep the transpose [H, V]
        "w_out": jax.random.normal(ks[5], (H, V), jnp.float32) * scale,
        "b_out": jax.random.normal(ks[6], (1, V), jnp.float32) * scale,
    }

    seq_lens = [7, 5]
    input_seqs = [
        jax.random.randint(ks[7], (seq_lens[0],), 0, V, jnp.int32),
        jax.random.randint(ks[8], (seq_lens[1],), 0, V, jnp.int32),
    ]
    hidden0 = jax.random.normal(ks[9], (B, H), jnp.float32) * scale
    encoder_outs = jax.random.normal(ks[10], (B, T, 2 * enc_hidden), jnp.float32)
    lengths = jnp.asarray(seq_lens, jnp.int32)
    teacher_forcing_ratio = 0.6

    out = decoder_forward(input_seqs, hidden0, encoder_outs, lengths,
                          teacher_forcing_ratio, params, ks[11])
    out = jax.block_until_ready(out)

    assert out.shape == (B, T, V), out.shape
    assert bool(jnp.all(jnp.isfinite(out)))
    # first step must be the hard-coded one-hot row
    assert float(out[0, 0, 0]) == 1.0 and float(jnp.sum(jnp.abs(out[:, 0, 1:]))) == 0.0

    print("KERNEL_OK")
</pallas_src>

<mosaic_0001>
module attributes {stable_mosaic.version = 11 : i64} {
  func.func @_decoder_kernel(%arg0: i32, %arg1: memref<8xi32, #tpu.memory_space<smem>>, %arg2: memref<8x8x384xf32, #tpu.memory_space<vmem>>, %arg3: memref<128x384xf32, #tpu.memory_space<vmem>>, %arg4: memref<8x32xf32, #tpu.memory_space<vmem>>, %arg5: memref<32x512xf32, #tpu.memory_space<vmem>>, %arg6: memref<1x32xf32, #tpu.memory_space<vmem>>, %arg7: memref<1x128xf32, #tpu.memory_space<vmem>>, %arg8: memref<8x8x128xf32, #tpu.memory_space<vmem>>) attributes {dimension_semantics = [#tpu.dimension_semantics<parallel>], iteration_bounds = array<i64: 1>, scalar_prefetch = 1 : i64, scratch_operands = 0 : i64, tpu.core_type = #tpu.core_type<tc>, window_params = [{transform_indices = @transform_0, window_bounds = array<i64: 8, 8, 384>}, {pipeline_mode = #tpu.pipeline_mode<synchronous>, transform_indices = @transform_1, window_bounds = array<i64: 128, 384>}, {transform_indices = @transform_2, window_bounds = array<i64: 8, 32>}, {pipeline_mode = #tpu.pipeline_mode<synchronous>, transform_indices = @transform_3, window_bounds = array<i64: 32, 512>}, {pipeline_mode = #tpu.pipeline_mode<synchronous>, transform_indices = @transform_4, window_bounds = array<i64: 1, 32>}, {pipeline_mode = #tpu.pipeline_mode<synchronous>, transform_indices = @transform_5, window_bounds = array<i64: 1, 128>}, {transform_indices = @transform_6, window_bounds = array<i64: 8, 8, 128>}]} {
    %0 = tpu.iota {dimensions = array<i32: 1>} : vector<8x128xi32>
    %c32_i32 = arith.constant 32 : i32
    %1 = vector.broadcast %c32_i32 : i32 to vector<8x128xi32>
    %2 = arith.cmpi slt, %0, %1 : vector<8x128xi32>
    %c0_i32 = arith.constant 0 : i32
    %3 = vector.broadcast %c0_i32 : i32 to vector<8x128xi32>
    %4 = arith.cmpi eq, %0, %3 : vector<8x128xi32>
    %5 = arith.extui %4 : vector<8x128xi1> to vector<8x128xi32>
    %6 = arith.sitofp %5 : vector<8x128xi32> to vector<8x128xf32>
    %c0 = arith.constant 0 : index
    %c0_0 = arith.constant 0 : index
    %c0_1 = arith.constant 0 : index
    %7 = vector.load %arg8[%c0, %c0_0, %c0_1] : memref<8x8x128xf32, #tpu.memory_space<vmem>>, vector<1x8x128xf32>
    %8 = vector.shape_cast %7 : vector<1x8x128xf32> to vector<8x128xf32>
    %9 = vector.shape_cast %6 : vector<8x128xf32> to vector<1x8x128xf32>
    tpu.vector_store %arg8[%c0, %c0_0, %c0_1], %9 {strides = array<i32>} : memref<8x8x128xf32, #tpu.memory_space<vmem>>, vector<1x8x128xf32>,
    %c0_2 = arith.constant 0 : index
    %c0_3 = arith.constant 0 : index
    %10 = vector.load %arg6[%c0_2, %c0_3] : memref<1x32xf32, #tpu.memory_space<vmem>>, vector<1x32xf32>
    %11 = vector.shape_cast %10 : vector<1x32xf32> to vector<1x32xf32>
    %12 = vector.broadcast %11 : vector<1x32xf32> to vector<8x32xf32>
    %c0_4 = arith.constant 0 : index
    %c0_5 = arith.constant 0 : index
    %13 = vector.load %arg7[%c0_4, %c0_5] : memref<1x128xf32, #tpu.memory_space<vmem>>, vector<1x128xf32>
    %14 = vector.shape_cast %13 : vector<1x128xf32> to vector<1x128xf32>
    %15 = vector.broadcast %14 : vector<1x128xf32> to vector<8x128xf32>
    %c0_6 = arith.constant 0 : index
    %c0_7 = arith.constant 0 : index
    %16 = vector.load %arg4[%c0_6, %c0_7] : memref<8x32xf32, #tpu.memory_space<vmem>>, vector<8x32xf32>
    %c0_8 = arith.constant 0 : index
    %c0_9 = arith.constant 0 : index
    %17 = vector.load %arg5[%c0_8, %c0_9] : memref<32x512xf32, #tpu.memory_space<vmem>>, vector<32x512xf32>
    %cst = arith.constant dense<0.000000e+00> : vector<8x512xf32>
    %18 = tpu.matmul %16, %17, %cst {dimension_numbers = #tpu.dot_dimension_numbers<[1], [0], [0], [1], [0, 0, 1, 1], [], []>} : vector<8x32xf32>, vector<32x512xf32>, vector<8x512xf32> -> vector<8x512xf32>
    %c1 = arith.constant 1 : index
    %19 = memref.load %arg1[%c1] : memref<8xi32, #tpu.memory_space<smem>>
    %c0_i32_10 = arith.constant 0 : i32
    %20 = arith.cmpi ne, %19, %c0_i32_10 : i32
    %cst_11 = arith.constant 0xFF800000 : f32
    %21 = vector.broadcast %cst_11 : f32 to vector<8x128xf32>
    %22 = arith.select %2, %6, %21 : vector<8x128xi1>, vector<8x128xf32>
    %cst_12 = arith.constant dense<0xFF800000> : vector<8xf32>
    %23 = vector.multi_reduction <maximumf>, %22, %cst_12 [1] : vector<8x128xf32> to vector<8xf32>
    %24 = vector.shape_cast %23 : vector<8xf32> to vector<8x1xf32>
    %25 = vector.broadcast %24 : vector<8x1xf32> to vector<8x128xf32>
    %26 = arith.cmpf oeq, %22, %25 : vector<8x128xf32>
    %27 = arith.extui %26 : vector<8x128xi1> to vector<8x128xi32>
    %28 = arith.sitofp %27 : vector<8x128xi32> to vector<8x128xf32>
    %c0_13 = arith.constant 0 : index
    %c0_14 = arith.constant 0 : index
    %29 = vector.load %arg3[%c0_13, %c0_14] : memref<128x384xf32, #tpu.memory_space<vmem>>, vector<128x384xf32>
    %cst_15 = arith.constant dense<0.000000e+00> : vector<8x384xf32>
    %30 = tpu.matmul %28, %29, %cst_15 {dimension_numbers = #tpu.dot_dimension_numbers<[1], [0], [0], [1], [0, 0, 1, 1], [], []>} : vector<8x128xf32>, vector<128x384xf32>, vector<8x384xf32> -> vector<8x384xf32>
    %c1_16 = arith.constant 1 : index
    %c0_17 = arith.constant 0 : index
    %c0_18 = arith.constant 0 : index
    %31 = vector.load %arg2[%c1_16, %c0_17, %c0_18] : memref<8x8x384xf32, #tpu.memory_space<vmem>>, vector<1x8x384xf32>
    %32 = vector.shape_cast %31 : vector<1x8x384xf32> to vector<8x384xf32>
    %33 = arith.select %20, %32, %30 : vector<8x384xf32>
    %34 = vector.extract_strided_slice %33 {offsets = [0, 0], sizes = [8, 32], strides = [1, 1]} : vector<8x384xf32> to vector<8x32xf32>
    %35 = vector.extract_strided_slice %18 {offsets = [0, 0], sizes = [8, 32], strides = [1, 1]} : vector<8x512xf32> to vector<8x32xf32>
    %36 = arith.addf %34, %35 : vector<8x32xf32>
    %37 = arith.negf %36 : vector<8x32xf32>
    %38 = math.exp %37 : vector<8x32xf32>
    %cst_19 = arith.constant 1.000000e+00 : f32
    %39 = vector.broadcast %cst_19 : f32 to vector<8x32xf32>
    %40 = arith.addf %39, %38 : vector<8x32xf32>
    %41 = arith.divf %39, %40 : vector<8x32xf32>
    %42 = vector.extract_strided_slice %33 {offsets = [0, 128], sizes = [8, 32], strides = [1, 1]} : vector<8x384xf32> to vector<8x32xf32>
    %43 = vector.extract_strided_slice %18 {offsets = [0, 128], sizes = [8, 32], strides = [1, 1]} : vector<8x512xf32> to vector<8x32xf32>
    %44 = arith.addf %42, %43 : vector<8x32xf32>
    %45 = arith.negf %44 : vector<8x32xf32>
    %46 = math.exp %45 : vector<8x32xf32>
    %cst_20 = arith.constant 1.000000e+00 : f32
    %47 = vector.broadcast %cst_20 : f32 to vector<8x32xf32>
    %48 = arith.addf %47, %46 : vector<8x32xf32>
    %49 = arith.divf %47, %48 : vector<8x32xf32>
    %50 = vector.extract_strided_slice %33 {offsets = [0, 256], sizes = [8, 32], strides = [1, 1]} : vector<8x384xf32> to vector<8x32xf32>
    %51 = vector.extract_strided_slice %18 {offsets = [0, 256], sizes = [8, 32], strides = [1, 1]} : vector<8x512xf32> to vector<8x32xf32>
    %52 = arith.addf %51, %12 : vector<8x32xf32>
    %53 = arith.mulf %41, %52 : vector<8x32xf32>
    %54 = arith.addf %50, %53 : vector<8x32xf32>
    %55 = math.tanh %54 : vector<8x32xf32>
    %cst_21 = arith.constant 1.000000e+00 : f32
    %56 = vector.broadcast %cst_21 : f32 to vector<8x32xf32>
    %57 = arith.subf %56, %49 : vector<8x32xf32>
    %58 = arith.mulf %57, %55 : vector<8x32xf32>
    %59 = arith.mulf %49, %16 : vector<8x32xf32>
    %60 = arith.addf %58, %59 : vector<8x32xf32>
    %c0_22 = arith.constant 0 : index
    %c0_23 = arith.constant 0 : index
    %61 = vector.load %arg5[%c0_22, %c0_23] : memref<32x512xf32, #tpu.memory_space<vmem>>, vector<32x512xf32>
    %cst_24 = arith.constant dense<0.000000e+00> : vector<8x512xf32>
    %62 = tpu.matmul %60, %61, %cst_24 {dimension_numbers = #tpu.dot_dimension_numbers<[1], [0], [0], [1], [0, 0, 1, 1], [], []>} : vector<8x32xf32>, vector<32x512xf32>, vector<8x512xf32> -> vector<8x512xf32>
    %63 = vector.extract_strided_slice %62 {offsets = [0, 384], sizes = [8, 128], strides = [1, 1]} : vector<8x512xf32> to vector<8x128xf32>
    %64 = arith.addf %63, %15 : vector<8x128xf32>
    %c1_25 = arith.constant 1 : index
    %c0_26 = arith.constant 0 : index
    %c0_27 = arith.constant 0 : index
    %65 = vector.load %arg8[%c1_25, %c0_26, %c0_27] : memref<8x8x128xf32, #tpu.memory_space<vmem>>, vector<1x8x128xf32>
    %66 = vector.shape_cast %65 : vector<1x8x128xf32> to vector<8x128xf32>
    %67 = vector.shape_cast %64 : vector<8x128xf32> to vector<1x8x128xf32>
    tpu.vector_store %arg8[%c1_25, %c0_26, %c0_27], %67 {strides = array<i32>} : memref<8x8x128xf32, #tpu.memory_space<vmem>>, vector<1x8x128xf32>,
    %c2 = arith.constant 2 : index
    %68 = memref.load %arg1[%c2] : memref<8xi32, #tpu.memory_space<smem>>
    %c0_i32_28 = arith.constant 0 : i32
    %69 = arith.cmpi ne, %68, %c0_i32_28 : i32
    %cst_29 = arith.constant 0xFF800000 : f32
    %70 = vector.broadcast %cst_29 : f32 to vector<8x128xf32>
    %71 = arith.select %2, %64, %70 : vector<8x128xi1>, vector<8x128xf32>
    %cst_30 = arith.constant dense<0xFF800000> : vector<8xf32>
    %72 = vector.multi_reduction <maximumf>, %71, %cst_30 [1] : vector<8x128xf32> to vector<8xf32>
    %73 = vector.shape_cast %72 : vector<8xf32> to vector<8x1xf32>
    %74 = vector.broadcast %73 : vector<8x1xf32> to vector<8x128xf32>
    %75 = arith.cmpf oeq, %71, %74 : vector<8x128xf32>
    %76 = arith.extui %75 : vector<8x128xi1> to vector<8x128xi32>
    %77 = arith.sitofp %76 : vector<8x128xi32> to vector<8x128xf32>
    %c0_31 = arith.constant 0 : index
    %c0_32 = arith.constant 0 : index
    %78 = vector.load %arg3[%c0_31, %c0_32] : memref<128x384xf32, #tpu.memory_space<vmem>>, vector<128x384xf32>
    %cst_33 = arith.constant dense<0.000000e+00> : vector<8x384xf32>
    %79 = tpu.matmul %77, %78, %cst_33 {dimension_numbers = #tpu.dot_dimension_numbers<[1], [0], [0], [1], [0, 0, 1, 1], [], []>} : vector<8x128xf32>, vector<128x384xf32>, vector<8x384xf32> -> vector<8x384xf32>
    %c2_34 = arith.constant 2 : index
    %c0_35 = arith.constant 0 : index
    %c0_36 = arith.constant 0 : index
    %80 = vector.load %arg2[%c2_34, %c0_35, %c0_36] : memref<8x8x384xf32, #tpu.memory_space<vmem>>, vector<1x8x384xf32>
    %81 = vector.shape_cast %80 : vector<1x8x384xf32> to vector<8x384xf32>
    %82 = arith.select %69, %81, %79 : vector<8x384xf32>
    %83 = vector.extract_strided_slice %82 {offsets = [0, 0], sizes = [8, 32], strides = [1, 1]} : vector<8x384xf32> to vector<8x32xf32>
    %84 = vector.extract_strided_slice %62 {offsets = [0, 0], sizes = [8, 32], strides = [1, 1]} : vector<8x512xf32> to vector<8x32xf32>
    %85 = arith.addf %83, %84 : vector<8x32xf32>
    %86 = arith.negf %85 : vector<8x32xf32>
    %87 = math.exp %86 : vector<8x32xf32>
    %cst_37 = arith.constant 1.000000e+00 : f32
    %88 = vector.broadcast %cst_37 : f32 to vector<8x32xf32>
    %89 = arith.addf %88, %87 : vector<8x32xf32>
    %90 = arith.divf %88, %89 : vector<8x32xf32>
    %91 = vector.extract_strided_slice %82 {offsets = [0, 128], sizes = [8, 32], strides = [1, 1]} : vector<8x384xf32> to vector<8x32xf32>
    %92 = vector.extract_strided_slice %62 {offsets = [0, 128], sizes = [8, 32], strides = [1, 1]} : vector<8x512xf32> to vector<8x32xf32>
    %93 = arith.addf %91, %92 : vector<8x32xf32>
    %94 = arith.negf %93 : vector<8x32xf32>
    %95 = math.exp %94 : vector<8x32xf32>
    %cst_38 = arith.constant 1.000000e+00 : f32
    %96 = vector.broadcast %cst_38 : f32 to vector<8x32xf32>
    %97 = arith.addf %96, %95 : vector<8x32xf32>
    %98 = arith.divf %96, %97 : vector<8x32xf32>
    %99 = vector.extract_strided_slice %82 {offsets = [0, 256], sizes = [8, 32], strides = [1, 1]} : vector<8x384xf32> to vector<8x32xf32>
    %100 = vector.extract_strided_slice %62 {offsets = [0, 256], sizes = [8, 32], strides = [1, 1]} : vector<8x512xf32> to vector<8x32xf32>
    %101 = arith.addf %100, %12 : vector<8x32xf32>
    %102 = arith.mulf %90, %101 : vector<8x32xf32>
    %103 = arith.addf %99, %102 : vector<8x32xf32>
    %104 = math.tanh %103 : vector<8x32xf32>
    %cst_39 = arith.constant 1.000000e+00 : f32
    %105 = vector.broadcast %cst_39 : f32 to vector<8x32xf32>
    %106 = arith.subf %105, %98 : vector<8x32xf32>
    %107 = arith.mulf %106, %104 : vector<8x32xf32>
    %108 = arith.mulf %98, %60 : vector<8x32xf32>
    %109 = arith.addf %107, %108 : vector<8x32xf32>
    %c0_40 = arith.constant 0 : index
    %c0_41 = arith.constant 0 : index
    %110 = vector.load %arg5[%c0_40, %c0_41] : memref<32x512xf32, #tpu.memory_space<vmem>>, vector<32x512xf32>
    %cst_42 = arith.constant dense<0.000000e+00> : vector<8x512xf32>
    %111 = tpu.matmul %109, %110, %cst_42 {dimension_numbers = #tpu.dot_dimension_numbers<[1], [0], [0], [1], [0, 0, 1, 1], [], []>} : vector<8x32xf32>, vector<32x512xf32>, vector<8x512xf32> -> vector<8x512xf32>
    %112 = vector.extract_strided_slice %111 {offsets = [0, 384], sizes = [8, 128], strides = [1, 1]} : vector<8x512xf32> to vector<8x128xf32>
    %113 = arith.addf %112, %15 : vector<8x128xf32>
    %c2_43 = arith.constant 2 : index
    %c0_44 = arith.constant 0 : index
    %c0_45 = arith.constant 0 : index
    %114 = vector.load %arg8[%c2_43, %c0_44, %c0_45] : memref<8x8x128xf32, #tpu.memory_space<vmem>>, vector<1x8x128xf32>
    %115 = vector.shape_cast %114 : vector<1x8x128xf32> to vector<8x128xf32>
    %116 = vector.shape_cast %113 : vector<8x128xf32> to vector<1x8x128xf32>
    tpu.vector_store %arg8[%c2_43, %c0_44, %c0_45], %116 {strides = array<i32>} : memref<8x8x128xf32, #tpu.memory_space<vmem>>, vector<1x8x128xf32>,
    %c3 = arith.constant 3 : index
    %117 = memref.load %arg1[%c3] : memref<8xi32, #tpu.memory_space<smem>>
    %c0_i32_46 = arith.constant 0 : i32
    %118 = arith.cmpi ne, %117, %c0_i32_46 : i32
    %cst_47 = arith.constant 0xFF800000 : f32
    %119 = vector.broadcast %cst_47 : f32 to vector<8x128xf32>
    %120 = arith.select %2, %113, %119 : vector<8x128xi1>, vector<8x128xf32>
    %cst_48 = arith.constant dense<0xFF800000> : vector<8xf32>
    %121 = vector.multi_reduction <maximumf>, %120, %cst_48 [1] : vector<8x128xf32> to vector<8xf32>
    %122 = vector.shape_cast %121 : vector<8xf32> to vector<8x1xf32>
    %123 = vector.broadcast %122 : vector<8x1xf32> to vector<8x128xf32>
    %124 = arith.cmpf oeq, %120, %123 : vector<8x128xf32>
    %125 = arith.extui %124 : vector<8x128xi1> to vector<8x128xi32>
    %126 = arith.sitofp %125 : vector<8x128xi32> to vector<8x128xf32>
    %c0_49 = arith.constant 0 : index
    %c0_50 = arith.constant 0 : index
    %127 = vector.load %arg3[%c0_49, %c0_50] : memref<128x384xf32, #tpu.memory_space<vmem>>, vector<128x384xf32>
    %cst_51 = arith.constant dense<0.000000e+00> : vector<8x384xf32>
    %128 = tpu.matmul %126, %127, %cst_51 {dimension_numbers = #tpu.dot_dimension_numbers<[1], [0], [0], [1], [0, 0, 1, 1], [], []>} : vector<8x128xf32>, vector<128x384xf32>, vector<8x384xf32> -> vector<8x384xf32>
    %c3_52 = arith.constant 3 : index
    %c0_53 = arith.constant 0 : index
    %c0_54 = arith.constant 0 : index
    %129 = vector.load %arg2[%c3_52, %c0_53, %c0_54] : memref<8x8x384xf32, #tpu.memory_space<vmem>>, vector<1x8x384xf32>
    %130 = vector.shape_cast %129 : vector<1x8x384xf32> to vector<8x384xf32>
    %131 = arith.select %118, %130, %128 : vector<8x384xf32>
    %132 = vector.extract_strided_slice %131 {offsets = [0, 0], sizes = [8, 32], strides = [1, 1]} : vector<8x384xf32> to vector<8x32xf32>
    %133 = vector.extract_strided_slice %111 {offsets = [0, 0], sizes = [8, 32], strides = [1, 1]} : vector<8x512xf32> to vector<8x32xf32>
    %134 = arith.addf %132, %133 : vector<8x32xf32>
    %135 = arith.negf %134 : vector<8x32xf32>
    %136 = math.exp %135 : vector<8x32xf32>
    %cst_55 = arith.constant 1.000000e+00 : f32
    %137 = vector.broadcast %cst_55 : f32 to vector<8x32xf32>
    %138 = arith.addf %137, %136 : vector<8x32xf32>
    %139 = arith.divf %137, %138 : vector<8x32xf32>
    %140 = vector.extract_strided_slice %131 {offsets = [0, 128], sizes = [8, 32], strides = [1, 1]} : vector<8x384xf32> to vector<8x32xf32>
    %141 = vector.extract_strided_slice %111 {offsets = [0, 128], sizes = [8, 32], strides = [1, 1]} : vector<8x512xf32> to vector<8x32xf32>
    %142 = arith.addf %140, %141 : vector<8x32xf32>
    %143 = arith.negf %142 : vector<8x32xf32>
    %144 = math.exp %143 : vector<8x32xf32>
    %cst_56 = arith.constant 1.000000e+00 : f32
    %145 = vector.broadcast %cst_56 : f32 to vector<8x32xf32>
    %146 = arith.addf %145, %144 : vector<8x32xf32>
    %147 = arith.divf %145, %146 : vector<8x32xf32>
    %148 = vector.extract_strided_slice %131 {offsets = [0, 256], sizes = [8, 32], strides = [1, 1]} : vector<8x384xf32> to vector<8x32xf32>
    %149 = vector.extract_strided_slice %111 {offsets = [0, 256], sizes = [8, 32], strides = [1, 1]} : vector<8x512xf32> to vector<8x32xf32>
    %150 = arith.addf %149, %12 : vector<8x32xf32>
    %151 = arith.mulf %139, %150 : vector<8x32xf32>
    %152 = arith.addf %148, %151 : vector<8x32xf32>
    %153 = math.tanh %152 : vector<8x32xf32>
    %cst_57 = arith.constant 1.000000e+00 : f32
    %154 = vector.broadcast %cst_57 : f32 to vector<8x32xf32>
    %155 = arith.subf %154, %147 : vector<8x32xf32>
    %156 = arith.mulf %155, %153 : vector<8x32xf32>
    %157 = arith.mulf %147, %109 : vector<8x32xf32>
    %158 = arith.addf %156, %157 : vector<8x32xf32>
    %c0_58 = arith.constant 0 : index
    %c0_59 = arith.constant 0 : index
    %159 = vector.load %arg5[%c0_58, %c0_59] : memref<32x512xf32, #tpu.memory_space<vmem>>, vector<32x512xf32>
    %cst_60 = arith.constant dense<0.000000e+00> : vector<8x512xf32>
    %160 = tpu.matmul %158, %159, %cst_60 {dimension_numbers = #tpu.dot_dimension_numbers<[1], [0], [0], [1], [0, 0, 1, 1], [], []>} : vector<8x32xf32>, vector<32x512xf32>, vector<8x512xf32> -> vector<8x512xf32>
    %161 = vector.extract_strided_slice %160 {offsets = [0, 384], sizes = [8, 128], strides = [1, 1]} : vector<8x512xf32> to vector<8x128xf32>
    %162 = arith.addf %161, %15 : vector<8x128xf32>
    %c3_61 = arith.constant 3 : index
    %c0_62 = arith.constant 0 : index
    %c0_63 = arith.constant 0 : index
    %163 = vector.load %arg8[%c3_61, %c0_62, %c0_63] : memref<8x8x128xf32, #tpu.memory_space<vmem>>, vector<1x8x128xf32>
    %164 = vector.shape_cast %163 : vector<1x8x128xf32> to vector<8x128xf32>
    %165 = vector.shape_cast %162 : vector<8x128xf32> to vector<1x8x128xf32>
    tpu.vector_store %arg8[%c3_61, %c0_62, %c0_63], %165 {strides = array<i32>} : memref<8x8x128xf32, #tpu.memory_space<vmem>>, vector<1x8x128xf32>,
    %c4 = arith.constant 4 : index
    %166 = memref.load %arg1[%c4] : memref<8xi32, #tpu.memory_space<smem>>
    %c0_i32_64 = arith.constant 0 : i32
    %167 = arith.cmpi ne, %166, %c0_i32_64 : i32
    %cst_65 = arith.constant 0xFF800000 : f32
    %168 = vector.broadcast %cst_65 : f32 to vector<8x128xf32>
    %169 = arith.select %2, %162, %168 : vector<8x128xi1>, vector<8x128xf32>
    %cst_66 = arith.constant dense<0xFF800000> : vector<8xf32>
    %170 = vector.multi_reduction <maximumf>, %169, %cst_66 [1] : vector<8x128xf32> to vector<8xf32>
    %171 = vector.shape_cast %170 : vector<8xf32> to vector<8x1xf32>
    %172 = vector.broadcast %171 : vector<8x1xf32> to vector<8x128xf32>
    %173 = arith.cmpf oeq, %169, %172 : vector<8x128xf32>
    %174 = arith.extui %173 : vector<8x128xi1> to vector<8x128xi32>
    %175 = arith.sitofp %174 : vector<8x128xi32> to vector<8x128xf32>
    %c0_67 = arith.constant 0 : index
    %c0_68 = arith.constant 0 : index
    %176 = vector.load %arg3[%c0_67, %c0_68] : memref<128x384xf32, #tpu.memory_space<vmem>>, vector<128x384xf32>
    %cst_69 = arith.constant dense<0.000000e+00> : vector<8x384xf32>
    %177 = tpu.matmul %175, %176, %cst_69 {dimension_numbers = #tpu.dot_dimension_numbers<[1], [0], [0], [1], [0, 0, 1, 1], [], []>} : vector<8x128xf32>, vector<128x384xf32>, vector<8x384xf32> -> vector<8x384xf32>
    %c4_70 = arith.constant 4 : index
    %c0_71 = arith.constant 0 : index
    %c0_72 = arith.constant 0 : index
    %178 = vector.load %arg2[%c4_70, %c0_71, %c0_72] : memref<8x8x384xf32, #tpu.memory_space<vmem>>, vector<1x8x384xf32>
    %179 = vector.shape_cast %178 : vector<1x8x384xf32> to vector<8x384xf32>
    %180 = arith.select %167, %179, %177 : vector<8x384xf32>
    %181 = vector.extract_strided_slice %180 {offsets = [0, 0], sizes = [8, 32], strides = [1, 1]} : vector<8x384xf32> to vector<8x32xf32>
    %182 = vector.extract_strided_slice %160 {offsets = [0, 0], sizes = [8, 32], strides = [1, 1]} : vector<8x512xf32> to vector<8x32xf32>
    %183 = arith.addf %181, %182 : vector<8x32xf32>
    %184 = arith.negf %183 : vector<8x32xf32>
    %185 = math.exp %184 : vector<8x32xf32>
    %cst_73 = arith.constant 1.000000e+00 : f32
    %186 = vector.broadcast %cst_73 : f32 to vector<8x32xf32>
    %187 = arith.addf %186, %185 : vector<8x32xf32>
    %188 = arith.divf %186, %187 : vector<8x32xf32>
    %189 = vector.extract_strided_slice %180 {offsets = [0, 128], sizes = [8, 32], strides = [1, 1]} : vector<8x384xf32> to vector<8x32xf32>
    %190 = vector.extract_strided_slice %160 {offsets = [0, 128], sizes = [8, 32], strides = [1, 1]} : vector<8x512xf32> to vector<8x32xf32>
    %191 = arith.addf %189, %190 : vector<8x32xf32>
    %192 = arith.negf %191 : vector<8x32xf32>
    %193 = math.exp %192 : vector<8x32xf32>
    %cst_74 = arith.constant 1.000000e+00 : f32
    %194 = vector.broadcast %cst_74 : f32 to vector<8x32xf32>
    %195 = arith.addf %194, %193 : vector<8x32xf32>
    %196 = arith.divf %194, %195 : vector<8x32xf32>
    %197 = vector.extract_strided_slice %180 {offsets = [0, 256], sizes = [8, 32], strides = [1, 1]} : vector<8x384xf32> to vector<8x32xf32>
    %198 = vector.extract_strided_slice %160 {offsets = [0, 256], sizes = [8, 32], strides = [1, 1]} : vector<8x512xf32> to vector<8x32xf32>
    %199 = arith.addf %198, %12 : vector<8x32xf32>
    %200 = arith.mulf %188, %199 : vector<8x32xf32>
    %201 = arith.addf %197, %200 : vector<8x32xf32>
    %202 = math.tanh %201 : vector<8x32xf32>
    %cst_75 = arith.constant 1.000000e+00 : f32
    %203 = vector.broadcast %cst_75 : f32 to vector<8x32xf32>
    %204 = arith.subf %203, %196 : vector<8x32xf32>
    %205 = arith.mulf %204, %202 : vector<8x32xf32>
    %206 = arith.mulf %196, %158 : vector<8x32xf32>
    %207 = arith.addf %205, %206 : vector<8x32xf32>
    %c0_76 = arith.constant 0 : index
    %c0_77 = arith.constant 0 : index
    %208 = vector.load %arg5[%c0_76, %c0_77] : memref<32x512xf32, #tpu.memory_space<vmem>>, vector<32x512xf32>
    %cst_78 = arith.constant dense<0.000000e+00> : vector<8x512xf32>
    %209 = tpu.matmul %207, %208, %cst_78 {dimension_numbers = #tpu.dot_dimension_numbers<[1], [0], [0], [1], [0, 0, 1, 1], [], []>} : vector<8x32xf32>, vector<32x512xf32>, vector<8x512xf32> -> vector<8x512xf32>
    %210 = vector.extract_strided_slice %209 {offsets = [0, 384], sizes = [8, 128], strides = [1, 1]} : vector<8x512xf32> to vector<8x128xf32>
    %211 = arith.addf %210, %15 : vector<8x128xf32>
    %c4_79 = arith.constant 4 : index
    %c0_80 = arith.constant 0 : index
    %c0_81 = arith.constant 0 : index
    %212 = vector.load %arg8[%c4_79, %c0_80, %c0_81] : memref<8x8x128xf32, #tpu.memory_space<vmem>>, vector<1x8x128xf32>
    %213 = vector.shape_cast %212 : vector<1x8x128xf32> to vector<8x128xf32>
    %214 = vector.shape_cast %211 : vector<8x128xf32> to vector<1x8x128xf32>
    tpu.vector_store %arg8[%c4_79, %c0_80, %c0_81], %214 {strides = array<i32>} : memref<8x8x128xf32, #tpu.memory_space<vmem>>, vector<1x8x128xf32>,
    %c5 = arith.constant 5 : index
    %215 = memref.load %arg1[%c5] : memref<8xi32, #tpu.memory_space<smem>>
    %c0_i32_82 = arith.constant 0 : i32
    %216 = arith.cmpi ne, %215, %c0_i32_82 : i32
    %cst_83 = arith.constant 0xFF800000 : f32
    %217 = vector.broadcast %cst_83 : f32 to vector<8x128xf32>
    %218 = arith.select %2, %211, %217 : vector<8x128xi1>, vector<8x128xf32>
    %cst_84 = arith.constant dense<0xFF800000> : vector<8xf32>
    %219 = vector.multi_reduction <maximumf>, %218, %cst_84 [1] : vector<8x128xf32> to vector<8xf32>
    %220 = vector.shape_cast %219 : vector<8xf32> to vector<8x1xf32>
    %221 = vector.broadcast %220 : vector<8x1xf32> to vector<8x128xf32>
    %222 = arith.cmpf oeq, %218, %221 : vector<8x128xf32>
    %223 = arith.extui %222 : vector<8x128xi1> to vector<8x128xi32>
    %224 = arith.sitofp %223 : vector<8x128xi32> to vector<8x128xf32>
    %c0_85 = arith.constant 0 : index
    %c0_86 = arith.constant 0 : index
    %225 = vector.load %arg3[%c0_85, %c0_86] : memref<128x384xf32, #tpu.memory_space<vmem>>, vector<128x384xf32>
    %cst_87 = arith.constant dense<0.000000e+00> : vector<8x384xf32>
    %226 = tpu.matmul %224, %225, %cst_87 {dimension_numbers = #tpu.dot_dimension_numbers<[1], [0], [0], [1], [0, 0, 1, 1], [], []>} : vector<8x128xf32>, vector<128x384xf32>, vector<8x384xf32> -> vector<8x384xf32>
    %c5_88 = arith.constant 5 : index
    %c0_89 = arith.constant 0 : index
    %c0_90 = arith.constant 0 : index
    %227 = vector.load %arg2[%c5_88, %c0_89, %c0_90] : memref<8x8x384xf32, #tpu.memory_space<vmem>>, vector<1x8x384xf32>
    %228 = vector.shape_cast %227 : vector<1x8x384xf32> to vector<8x384xf32>
    %229 = arith.select %216, %228, %226 : vector<8x384xf32>
    %230 = vector.extract_strided_slice %229 {offsets = [0, 0], sizes = [8, 32], strides = [1, 1]} : vector<8x384xf32> to vector<8x32xf32>
    %231 = vector.extract_strided_slice %209 {offsets = [0, 0], sizes = [8, 32], strides = [1, 1]} : vector<8x512xf32> to vector<8x32xf32>
    %232 = arith.addf %230, %231 : vector<8x32xf32>
    %233 = arith.negf %232 : vector<8x32xf32>
    %234 = math.exp %233 : vector<8x32xf32>
    %cst_91 = arith.constant 1.000000e+00 : f32
    %235 = vector.broadcast %cst_91 : f32 to vector<8x32xf32>
    %236 = arith.addf %235, %234 : vector<8x32xf32>
    %237 = arith.divf %235, %236 : vector<8x32xf32>
    %238 = vector.extract_strided_slice %229 {offsets = [0, 128], sizes = [8, 32], strides = [1, 1]} : vector<8x384xf32> to vector<8x32xf32>
    %239 = vector.extract_strided_slice %209 {offsets = [0, 128], sizes = [8, 32], strides = [1, 1]} : vector<8x512xf32> to vector<8x32xf32>
    %240 = arith.addf %238, %239 : vector<8x32xf32>
    %241 = arith.negf %240 : vector<8x32xf32>
    %242 = math.exp %241 : vector<8x32xf32>
    %cst_92 = arith.constant 1.000000e+00 : f32
    %243 = vector.broadcast %cst_92 : f32 to vector<8x32xf32>
    %244 = arith.addf %243, %242 : vector<8x32xf32>
    %245 = arith.divf %243, %244 : vector<8x32xf32>
    %246 = vector.extract_strided_slice %229 {offsets = [0, 256], sizes = [8, 32], strides = [1, 1]} : vector<8x384xf32> to vector<8x32xf32>
    %247 = vector.extract_strided_slice %209 {offsets = [0, 256], sizes = [8, 32], strides = [1, 1]} : vector<8x512xf32> to vector<8x32xf32>
    %248 = arith.addf %247, %12 : vector<8x32xf32>
    %249 = arith.mulf %237, %248 : vector<8x32xf32>
    %250 = arith.addf %246, %249 : vector<8x32xf32>
    %251 = math.tanh %250 : vector<8x32xf32>
    %cst_93 = arith.constant 1.000000e+00 : f32
    %252 = vector.broadcast %cst_93 : f32 to vector<8x32xf32>
    %253 = arith.subf %252, %245 : vector<8x32xf32>
    %254 = arith.mulf %253, %251 : vector<8x32xf32>
    %255 = arith.mulf %245, %207 : vector<8x32xf32>
    %256 = arith.addf %254, %255 : vector<8x32xf32>
    %c0_94 = arith.constant 0 : index
    %c0_95 = arith.constant 0 : index
    %257 = vector.load %arg5[%c0_94, %c0_95] : memref<32x512xf32, #tpu.memory_space<vmem>>, vector<32x512xf32>
    %cst_96 = arith.constant dense<0.000000e+00> : vector<8x512xf32>
    %258 = tpu.matmul %256, %257, %cst_96 {dimension_numbers = #tpu.dot_dimension_numbers<[1], [0], [0], [1], [0, 0, 1, 1], [], []>} : vector<8x32xf32>, vector<32x512xf32>, vector<8x512xf32> -> vector<8x512xf32>
    %259 = vector.extract_strided_slice %258 {offsets = [0, 384], sizes = [8, 128], strides = [1, 1]} : vector<8x512xf32> to vector<8x128xf32>
    %260 = arith.addf %259, %15 : vector<8x128xf32>
    %c5_97 = arith.constant 5 : index
    %c0_98 = arith.constant 0 : index
    %c0_99 = arith.constant 0 : index
    %261 = vector.load %arg8[%c5_97, %c0_98, %c0_99] : memref<8x8x128xf32, #tpu.memory_space<vmem>>, vector<1x8x128xf32>
    %262 = vector.shape_cast %261 : vector<1x8x128xf32> to vector<8x128xf32>
    %263 = vector.shape_cast %260 : vector<8x128xf32> to vector<1x8x128xf32>
    tpu.vector_store %arg8[%c5_97, %c0_98, %c0_99], %263 {strides = array<i32>} : memref<8x8x128xf32, #tpu.memory_space<vmem>>, vector<1x8x128xf32>,
    %c6 = arith.constant 6 : index
    %264 = memref.load %arg1[%c6] : memref<8xi32, #tpu.memory_space<smem>>
    %c0_i32_100 = arith.constant 0 : i32
    %265 = arith.cmpi ne, %264, %c0_i32_100 : i32
    %cst_101 = arith.constant 0xFF800000 : f32
    %266 = vector.broadcast %cst_101 : f32 to vector<8x128xf32>
    %267 = arith.select %2, %260, %266 : vector<8x128xi1>, vector<8x128xf32>
    %cst_102 = arith.constant dense<0xFF800000> : vector<8xf32>
    %268 = vector.multi_reduction <maximumf>, %267, %cst_102 [1] : vector<8x128xf32> to vector<8xf32>
    %269 = vector.shape_cast %268 : vector<8xf32> to vector<8x1xf32>
    %270 = vector.broadcast %269 : vector<8x1xf32> to vector<8x128xf32>
    %271 = arith.cmpf oeq, %267, %270 : vector<8x128xf32>
    %272 = arith.extui %271 : vector<8x128xi1> to vector<8x128xi32>
    %273 = arith.sitofp %272 : vector<8x128xi32> to vector<8x128xf32>
    %c0_103 = arith.constant 0 : index
    %c0_104 = arith.constant 0 : index
    %274 = vector.load %arg3[%c0_103, %c0_104] : memref<128x384xf32, #tpu.memory_space<vmem>>, vector<128x384xf32>
    %cst_105 = arith.constant dense<0.000000e+00> : vector<8x384xf32>
    %275 = tpu.matmul %273, %274, %cst_105 {dimension_numbers = #tpu.dot_dimension_numbers<[1], [0], [0], [1], [0, 0, 1, 1], [], []>} : vector<8x128xf32>, vector<128x384xf32>, vector<8x384xf32> -> vector<8x384xf32>
    %c6_106 = arith.constant 6 : index
    %c0_107 = arith.constant 0 : index
    %c0_108 = arith.constant 0 : index
    %276 = vector.load %arg2[%c6_106, %c0_107, %c0_108] : memref<8x8x384xf32, #tpu.memory_space<vmem>>, vector<1x8x384xf32>
    %277 = vector.shape_cast %276 : vector<1x8x384xf32> to vector<8x384xf32>
    %278 = arith.select %265, %277, %275 : vector<8x384xf32>
    %279 = vector.extract_strided_slice %278 {offsets = [0, 0], sizes = [8, 32], strides = [1, 1]} : vector<8x384xf32> to vector<8x32xf32>
    %280 = vector.extract_strided_slice %258 {offsets = [0, 0], sizes = [8, 32], strides = [1, 1]} : vector<8x512xf32> to vector<8x32xf32>
    %281 = arith.addf %279, %280 : vector<8x32xf32>
    %282 = arith.negf %281 : vector<8x32xf32>
    %283 = math.exp %282 : vector<8x32xf32>
    %cst_109 = arith.constant 1.000000e+00 : f32
    %284 = vector.broadcast %cst_109 : f32 to vector<8x32xf32>
    %285 = arith.addf %284, %283 : vector<8x32xf32>
    %286 = arith.divf %284, %285 : vector<8x32xf32>
    %287 = vector.extract_strided_slice %278 {offsets = [0, 128], sizes = [8, 32], strides = [1, 1]} : vector<8x384xf32> to vector<8x32xf32>
    %288 = vector.extract_strided_slice %258 {offsets = [0, 128], sizes = [8, 32], strides = [1, 1]} : vector<8x512xf32> to vector<8x32xf32>
    %289 = arith.addf %287, %288 : vector<8x32xf32>
    %290 = arith.negf %289 : vector<8x32xf32>
    %291 = math.exp %290 : vector<8x32xf32>
    %cst_110 = arith.constant 1.000000e+00 : f32
    %292 = vector.broadcast %cst_110 : f32 to vector<8x32xf32>
    %293 = arith.addf %292, %291 : vector<8x32xf32>
    %294 = arith.divf %292, %293 : vector<8x32xf32>
    %295 = vector.extract_strided_slice %278 {offsets = [0, 256], sizes = [8, 32], strides = [1, 1]} : vector<8x384xf32> to vector<8x32xf32>
    %296 = vector.extract_strided_slice %258 {offsets = [0, 256], sizes = [8, 32], strides = [1, 1]} : vector<8x512xf32> to vector<8x32xf32>
    %297 = arith.addf %296, %12 : vector<8x32xf32>
    %298 = arith.mulf %286, %297 : vector<8x32xf32>
    %299 = arith.addf %295, %298 : vector<8x32xf32>
    %300 = math.tanh %299 : vector<8x32xf32>
    %cst_111 = arith.constant 1.000000e+00 : f32
    %301 = vector.broadcast %cst_111 : f32 to vector<8x32xf32>
    %302 = arith.subf %301, %294 : vector<8x32xf32>
    %303 = arith.mulf %302, %300 : vector<8x32xf32>
    %304 = arith.mulf %294, %256 : vector<8x32xf32>
    %305 = arith.addf %303, %304 : vector<8x32xf32>
    %c0_112 = arith.constant 0 : index
    %c0_113 = arith.constant 0 : index
    %306 = vector.load %arg5[%c0_112, %c0_113] : memref<32x512xf32, #tpu.memory_space<vmem>>, vector<32x512xf32>
    %cst_114 = arith.constant dense<0.000000e+00> : vector<8x512xf32>
    %307 = tpu.matmul %305, %306, %cst_114 {dimension_numbers = #tpu.dot_dimension_numbers<[1], [0], [0], [1], [0, 0, 1, 1], [], []>} : vector<8x32xf32>, vector<32x512xf32>, vector<8x512xf32> -> vector<8x512xf32>
    %308 = vector.extract_strided_slice %307 {offsets = [0, 384], sizes = [8, 128], strides = [1, 1]} : vector<8x512xf32> to vector<8x128xf32>
    %309 = arith.addf %308, %15 : vector<8x128xf32>
    %c6_115 = arith.constant 6 : index
    %c0_116 = arith.constant 0 : index
    %c0_117 = arith.constant 0 : index
    %310 = vector.load %arg8[%c6_115, %c0_116, %c0_117] : memref<8x8x128xf32, #tpu.memory_space<vmem>>, vector<1x8x128xf32>
    %311 = vector.shape_cast %310 : vector<1x8x128xf32> to vector<8x128xf32>
    %312 = vector.shape_cast %309 : vector<8x128xf32> to vector<1x8x128xf32>
    tpu.vector_store %arg8[%c6_115, %c0_116, %c0_117], %312 {strides = array<i32>} : memref<8x8x128xf32, #tpu.memory_space<vmem>>, vector<1x8x128xf32>,
    %c7 = arith.constant 7 : index
    %313 = memref.load %arg1[%c7] : memref<8xi32, #tpu.memory_space<smem>>
    %c0_i32_118 = arith.constant 0 : i32
    %314 = arith.cmpi ne, %313, %c0_i32_118 : i32
    %cst_119 = arith.constant 0xFF800000 : f32
    %315 = vector.broadcast %cst_119 : f32 to vector<8x128xf32>
    %316 = arith.select %2, %309, %315 : vector<8x128xi1>, vector<8x128xf32>
    %cst_120 = arith.constant dense<0xFF800000> : vector<8xf32>
    %317 = vector.multi_reduction <maximumf>, %316, %cst_120 [1] : vector<8x128xf32> to vector<8xf32>
    %318 = vector.shape_cast %317 : vector<8xf32> to vector<8x1xf32>
    %319 = vector.broadcast %318 : vector<8x1xf32> to vector<8x128xf32>
    %320 = arith.cmpf oeq, %316, %319 : vector<8x128xf32>
    %321 = arith.extui %320 : vector<8x128xi1> to vector<8x128xi32>
    %322 = arith.sitofp %321 : vector<8x128xi32> to vector<8x128xf32>
    %c0_121 = arith.constant 0 : index
    %c0_122 = arith.constant 0 : index
    %323 = vector.load %arg3[%c0_121, %c0_122] : memref<128x384xf32, #tpu.memory_space<vmem>>, vector<128x384xf32>
    %cst_123 = arith.constant dense<0.000000e+00> : vector<8x384xf32>
    %324 = tpu.matmul %322, %323, %cst_123 {dimension_numbers = #tpu.dot_dimension_numbers<[1], [0], [0], [1], [0, 0, 1, 1], [], []>} : vector<8x128xf32>, vector<128x384xf32>, vector<8x384xf32> -> vector<8x384xf32>
    %c7_124 = arith.constant 7 : index
    %c0_125 = arith.constant 0 : index
    %c0_126 = arith.constant 0 : index
    %325 = vector.load %arg2[%c7_124, %c0_125, %c0_126] : memref<8x8x384xf32, #tpu.memory_space<vmem>>, vector<1x8x384xf32>
    %326 = vector.shape_cast %325 : vector<1x8x384xf32> to vector<8x384xf32>
    %327 = arith.select %314, %326, %324 : vector<8x384xf32>
    %328 = vector.extract_strided_slice %327 {offsets = [0, 0], sizes = [8, 32], strides = [1, 1]} : vector<8x384xf32> to vector<8x32xf32>
    %329 = vector.extract_strided_slice %307 {offsets = [0, 0], sizes = [8, 32], strides = [1, 1]} : vector<8x512xf32> to vector<8x32xf32>
    %330 = arith.addf %328, %329 : vector<8x32xf32>
    %331 = arith.negf %330 : vector<8x32xf32>
    %332 = math.exp %331 : vector<8x32xf32>
    %cst_127 = arith.constant 1.000000e+00 : f32
    %333 = vector.broadcast %cst_127 : f32 to vector<8x32xf32>
    %334 = arith.addf %333, %332 : vector<8x32xf32>
    %335 = arith.divf %333, %334 : vector<8x32xf32>
    %336 = vector.extract_strided_slice %327 {offsets = [0, 128], sizes = [8, 32], strides = [1, 1]} : vector<8x384xf32> to vector<8x32xf32>
    %337 = vector.extract_strided_slice %307 {offsets = [0, 128], sizes = [8, 32], strides = [1, 1]} : vector<8x512xf32> to vector<8x32xf32>
    %338 = arith.addf %336, %337 : vector<8x32xf32>
    %339 = arith.negf %338 : vector<8x32xf32>
    %340 = math.exp %339 : vector<8x32xf32>
    %cst_128 = arith.constant 1.000000e+00 : f32
    %341 = vector.broadcast %cst_128 : f32 to vector<8x32xf32>
    %342 = arith.addf %341, %340 : vector<8x32xf32>
    %343 = arith.divf %341, %342 : vector<8x32xf32>
    %344 = vector.extract_strided_slice %327 {offsets = [0, 256], sizes = [8, 32], strides = [1, 1]} : vector<8x384xf32> to vector<8x32xf32>
    %345 = vector.extract_strided_slice %307 {offsets = [0, 256], sizes = [8, 32], strides = [1, 1]} : vector<8x512xf32> to vector<8x32xf32>
    %346 = arith.addf %345, %12 : vector<8x32xf32>
    %347 = arith.mulf %335, %346 : vector<8x32xf32>
    %348 = arith.addf %344, %347 : vector<8x32xf32>
    %349 = math.tanh %348 : vector<8x32xf32>
    %cst_129 = arith.constant 1.000000e+00 : f32
    %350 = vector.broadcast %cst_129 : f32 to vector<8x32xf32>
    %351 = arith.subf %350, %343 : vector<8x32xf32>
    %352 = arith.mulf %351, %349 : vector<8x32xf32>
    %353 = arith.mulf %343, %305 : vector<8x32xf32>
    %354 = arith.addf %352, %353 : vector<8x32xf32>
    %c0_130 = arith.constant 0 : index
    %c0_131 = arith.constant 0 : index
    %355 = vector.load %arg5[%c0_130, %c0_131] : memref<32x512xf32, #tpu.memory_space<vmem>>, vector<32x512xf32>
    %cst_132 = arith.constant dense<0.000000e+00> : vector<8x512xf32>
    %356 = tpu.matmul %354, %355, %cst_132 {dimension_numbers = #tpu.dot_dimension_numbers<[1], [0], [0], [1], [0, 0, 1, 1], [], []>} : vector<8x32xf32>, vector<32x512xf32>, vector<8x512xf32> -> vector<8x512xf32>
    %357 = vector.extract_strided_slice %356 {offsets = [0, 384], sizes = [8, 128], strides = [1, 1]} : vector<8x512xf32> to vector<8x128xf32>
    %358 = arith.addf %357, %15 : vector<8x128xf32>
    %c7_133 = arith.constant 7 : index
    %c0_134 = arith.constant 0 : index
    %c0_135 = arith.constant 0 : index
    %359 = vector.load %arg8[%c7_133, %c0_134, %c0_135] : memref<8x8x128xf32, #tpu.memory_space<vmem>>, vector<1x8x128xf32>
    %360 = vector.shape_cast %359 : vector<1x8x128xf32> to vector<8x128xf32>
    %361 = vector.shape_cast %358 : vector<8x128xf32> to vector<1x8x128xf32>
    tpu.vector_store %arg8[%c7_133, %c0_134, %c0_135], %361 {strides = array<i32>} : memref<8x8x128xf32, #tpu.memory_space<vmem>>, vector<1x8x128xf32>,
    return
  }
  func.func @transform_0(%arg0: i32, %arg1: memref<8xi32, #tpu.memory_space<smem>>) -> (i32, i32, i32) {
    %c0_i32 = arith.constant 0 : i32
    %c0_i32_0 = arith.constant 0 : i32
    %c0_i32_1 = arith.constant 0 : i32
    return %c0_i32, %arg0, %c0_i32_0 : i32, i32, i32
  }
  func.func @transform_1(%arg0: i32, %arg1: memref<8xi32, #tpu.memory_space<smem>>) -> (i32, i32) {
    %c0_i32 = arith.constant 0 : i32
    %c0_i32_0 = arith.constant 0 : i32
    %c0_i32_1 = arith.constant 0 : i32
    return %c0_i32, %c0_i32_0 : i32, i32
  }
  func.func @transform_2(%arg0: i32, %arg1: memref<8xi32, #tpu.memory_space<smem>>) -> (i32, i32) {
    %c0_i32 = arith.constant 0 : i32
    %c0_i32_0 = arith.constant 0 : i32
    return %arg0, %c0_i32 : i32, i32
  }
  func.func @transform_3(%arg0: i32, %arg1: memref<8xi32, #tpu.memory_space<smem>>) -> (i32, i32) {
    %c0_i32 = arith.constant 0 : i32
    %c0_i32_0 = arith.constant 0 : i32
    %c0_i32_1 = arith.constant 0 : i32
    return %c0_i32, %c0_i32_0 : i32, i32
  }
  func.func @transform_4(%arg0: i32, %arg1: memref<8xi32, #tpu.memory_space<smem>>) -> (i32, i32) {
    %c0_i32 = arith.constant 0 : i32
    %c0_i32_0 = arith.constant 0 : i32
    %c0_i32_1 = arith.constant 0 : i32
    return %c0_i32, %c0_i32_0 : i32, i32
  }
  func.func @transform_5(%arg0: i32, %arg1: memref<8xi32, #tpu.memory_space<smem>>) -> (i32, i32) {
    %c0_i32 = arith.constant 0 : i32
    %c0_i32_0 = arith.constant 0 : i32
    %c0_i32_1 = arith.constant 0 : i32
    return %c0_i32, %c0_i32_0 : i32, i32
  }
  func.func @transform_6(%arg0: i32, %arg1: memref<8xi32, #tpu.memory_space<smem>>) -> (i32, i32, i32) {
    %c0_i32 = arith.constant 0 : i32
    %c0_i32_0 = arith.constant 0 : i32
    %c0_i32_1 = arith.constant 0 : i32
    return %c0_i32, %arg0, %c0_i32_0 : i32, i32, i32
  }
}

</mosaic_0001>

<bundles_post_ra>
// kernel: tpu_custom_call.1
= control target key start
LH: loop header
LB: loop body
LE: loop exit
PB: predicated region body
PF: predicated region fallthrough
CT: control target
= control target key end

     0   :  { %s3568_s24 = smov [#allocation3]   ;;  %s4658_s0 = inlined_call_operand.hbm [shape: s32[8], index: 0, kind: input, shape index: {}]   ;;  %s4659_s1 = inlined_call_operand.hbm [shape: f32[8,8,384], index: 1, kind: input, shape index: {}]   ;;  %s4660_s2 = inlined_call_operand.hbm [shape: f32[128,384], index: 2, kind: input, shape index: {}]   ;;  %s4661_s3 = inlined_call_operand.hbm [shape: f32[8,32], index: 3, kind: input, shape index: {}]   ;;  %s4662_s4 = inlined_call_operand.hbm [shape: f32[32,512], index: 4, kind: input, shape index: {}]   ;;  %s4663_s5 = inlined_call_operand.vmem [shape: f32[1,32], index: 5, kind: input, shape index: {}]   ;;  %s4664_s6 = inlined_call_operand.vmem [shape: f32[1,128], index: 6, kind: input, shape index: {}]   ;;  %s4665_s7 = inlined_call_operand.hbm [shape: f32[8,8,128], index: 7, kind: output, shape index: {}]  }
   0x1   :  { %13 = dma.hbm_to_smem %s4658_s0, 16, %s3568_s24, [#allocation2] }
   0x2   :  { %3558 = dma.done.wait [#allocation2], 16 }
   0x3   :  { %3559 = vsyncadd [#allocation2], 4294967280 }
   0x4   :  { %15 = sfence }
   0x5   :  { %16 = vsyncpa [#allocation5], 0 }
   0x6   :  { %17 = vsyncpa [#allocation8], 0 }
   0x7   :  { %18 = vsyncpa [#allocation11], 0 }
   0x8   :  { %19 = vsyncpa [#allocation6], 0  ;;  %s3569_s27 = smov [#allocation7]   ;;  %s3570_s29 = smov [#allocation4]  }
   0x9   :  { %s37_s28 = sshll.u32 %s3569_s27, 4  ;;  %s25_s30 = sshll.u32 %s3570_s29, 4  ;;  %s38_s28 = int_to_ptr.vmem [resolvable:$true] %s37_s28  ;;  %s26_s30 = int_to_ptr.vmem [resolvable:$true] %s25_s30 }
   0xa   :  { %s3466_s8 = scalar_lea.vmem %s38_s28, 6144  ;;  %p3471_p1 = scmp.lt.s32.totalorder %s38_s28, %s38_s28 }
   0xb   :  { %p3467_p0 = scmp.ne.s32.totalorder %s38_s28, %s3466_s8  ;;  %p3472_p2 = scmp.lt.s32.totalorder %s3466_s8, %s3466_s8 }
   0xd   :  { %p3473_p3 = por %p3472_p2, %p3471_p1 }
   0xf   :  { %p3474_p4 = pnand %p3473_p3, %p3467_p0 }
  0x11   :  { %3477 = shalt.err (!%p3474_p4)
}
  0x12   :  { %s3571_s0 = smov 384   ;;  %s3572_s9 = smov 24  }
  0x13   :  { %43 = dma.hbm_to_vmem [thread:$0]  %s4660_s2, 6144, %s38_s28, [#allocation8], %s3571_s0, %s3571_s0, %s3572_s9  }
  0x14   :  { %s3486_s12 = scalar_lea.vmem %s26_s30, 3072  ;;  %p3491_p6 = scmp.lt.s32.totalorder %s26_s30, %s26_s30 }
  0x15   :  { %p3487_p5 = scmp.ne.s32.totalorder %s26_s30, %s3486_s12  ;;  %p3492_p7 = scmp.lt.s32.totalorder %s3486_s12, %s3486_s12 }
  0x17   :  { %p3493_p8 = por %p3492_p7, %p3491_p6 }
  0x19   :  { %p3494_p9 = pnand %p3493_p8, %p3487_p5 }
  0x1b   :  { %3497 = shalt.err (!%p3494_p9)
}
  0x1c   :  { %31 = dma.hbm_to_vmem [thread:$0]  %s4659_s1, 3072, %s26_s30, [#allocation5], %s3571_s0, %s3571_s0, %s3572_s9  }
  0x1d   :  { %s3573_s15 = smov [#allocation9]   ;;  %s3574_s17 = smov [#allocation10]  }
  0x1e   :  { %s50_s16 = sshll.u32 %s3573_s15, 4  ;;  %s59_s18 = sshll.u32 %s3574_s17, 4  ;;  %s51_s16 = int_to_ptr.vmem [resolvable:$true] %s50_s16  ;;  %s60_s18 = int_to_ptr.vmem [resolvable:$true] %s59_s18 }
  0x1f   :  { %s3506_s19 = scalar_lea.vmem %s51_s16, 128  ;;  %p3511_p11 = scmp.lt.s32.totalorder %s51_s16, %s51_s16 }
  0x20   :  { %p3507_p10 = scmp.ne.s32.totalorder %s51_s16, %s3506_s19  ;;  %p3512_p12 = scmp.lt.s32.totalorder %s3506_s19, %s3506_s19 }
  0x22   :  { %p3513_p13 = por %p3512_p12, %p3511_p11 }
  0x24   :  { %p3514_p0 = pnand %p3513_p13, %p3507_p10 }
  0x26   :  { %3517 = shalt.err (!%p3514_p0)
}
  0x27   :  { %53 = dma.hbm_to_vmem [thread:$0]  %s4661_s3, 128, %s51_s16, [#allocation8]  }
  0x28   :  { %s3526_s21 = scalar_lea.vmem %s60_s18, 2048  ;;  %p3531_p2 = scmp.lt.s32.totalorder %s60_s18, %s60_s18 }
  0x29   :  { %p3527_p1 = scmp.ne.s32.totalorder %s60_s18, %s3526_s21  ;;  %p3532_p3 = scmp.lt.s32.totalorder %s3526_s21, %s3526_s21 }
  0x2b   :  { %p3533_p4 = por %p3532_p3, %p3531_p2 }
  0x2d   :  { %p3534_p5 = pnand %p3533_p4, %p3527_p1 }
  0x2f   :  { %3537 = shalt.err (!%p3534_p5)
}
  0x30   :  { %s3575_s1 = smov 512   ;;  %s3576_s22 = smov 32  }
  0x31   :  { %65 = dma.hbm_to_vmem [thread:$0]  %s4662_s4, 2048, %s60_s18, [#allocation11], %s3575_s1, %s3575_s1, %s3576_s22  }
  0x32   :  { %3560 = dma.done.wait [#allocation5], 3072  }
  0x33   :  { %3561 = vsyncadd [#allocation5], 4294964224 }
  0x34   :  { %3562 = dma.done.wait [#allocation8], 6272  }
  0x35   :  { %3563 = vsyncadd [#allocation8], 4294961024  ;;  %v82_v0 = vlaneseq }
  0x36   :  { %3564 = dma.done.wait [#allocation11], 2048  }
  0x37   :  { %3565 = vsyncadd [#allocation11], 4294965248  ;;  %v4688_v1 = vmov 0.0   ;;  %v3640_v2 = vand.u32 127, %v82_v0  ;;  %v3650_v5 = vld [vmem:[#allocation10 + $0x68] sm:$0xff]  ;;  %v3652_v6 = vld [vmem:[#allocation10 + $0x60] sm:$0xff] }
  0x38   :  { %188 = vmatprep.mubr.f32.mxu0 %v4688_v1  ;;  %259 = vmatprep.mubr.f32.mxu1 %v4688_v1  ;;  %4748 = vst [vmem:[#allocation19_spill] sm:$0xff] %v3652_v6  ;;  %v3654_v7 = vld [vmem:[#allocation10 + $0x78] sm:$0xff]  ;;  %v3658_v8 = vld [vmem:[#allocation10 + $0x48] sm:$0xff]  ;;  %v3660_v9 = vld [vmem:[#allocation10 + $0x70] sm:$0xff]  ;;  %vm120_vm2 = vcmask 261120   ;;  %vm3578_vm3 = vmmov 0  }
  0x39   :  { %4747 = vst [vmem:[#allocation18_spill] sm:$0xff] %v3640_v2  ;;  %vm84_vm0 = vcmp.lt.s32.totalorder %v3640_v2, 32  ;;  %vm85_vm1 = vcmp.eq.s32.totalorder %v3640_v2, 0  ;;  %148 = vmatprep.subr.mxu0 %v3650_v5  ;;  %219 = vmatprep.subr.mxu1 %v3654_v7  ;;  %4749 = vst [vmem:[#allocation20_spill] sm:$0xff] %v3658_v8  ;;  %v3662_v10 = vld [vmem:[#allocation10 + $0x40] sm:$0xff]  ;;  %v3666_v11 = vld [vmem:[#allocation10 + $0x58] sm:$0xff] }
  0x3a   :  { %v2939_v3 = vsel %vm85_vm1, 1.0, %v4688_v1  ;;  %4750 = vst [vmem:[#allocation21_spill] sm:$0xff] %v3660_v9  ;;  %4751 = vst [vmem:[#allocation22_spill] sm:$0xff] %v3662_v10  ;;  %149 = vmatpush1.msra.mxu0 %v3652_v6  ;;  %220 = vmatpush1.msra.mxu1 %v3660_v9  ;;  %v3668_v12 = vld [vmem:[#allocation10 + $0x28] sm:$0xff]  ;;  %v3670_v13 = vld [vmem:[#allocation10 + $0x50] sm:$0xff]  ;;  %s2944_s3 = sld [smem:[#allocation3 + $0x1]] }
  0x3b   :  { %v3647_v4 = vsel %vm84_vm0, %v2939_v3, -inf  ;;  %88 = vst [vmem:[#allocation12] sm:$0xff] %v2939_v3  ;;  %4752 = vst [vmem:[#allocation23_spill] sm:$0xff] %v3666_v11  ;;  %150 = vmatprep.subr.mxu0 %v3658_v8  ;;  %221 = vmatprep.subr.mxu1 %v3666_v11  ;;  %v3674_v14 = vld [vmem:[#allocation10 + $0x20] sm:$0xff]  ;;  %v3676_v15 = vld [vmem:[#allocation10 + $0x38] sm:$0xff]  ;;  %s2952_s29 = sld [smem:[#allocation3 + $0x2]] }
  0x3c   :  { %268 = vmax.xlane.f32.xlu0 %v3647_v4  ;;  %4753 = vst [vmem:[#allocation24_spill] sm:$0xff] %v3668_v12  ;;  %4754 = vst [vmem:[#allocation25_spill] sm:$0xff] %v3670_v13  ;;  %151 = vmatpush1.msra.mxu0 %v3662_v10  ;;  %v3680_v16 = vld [vmem:[#allocation10 + $0x8] sm:$0xff]  ;;  %v3682_v17 = vld [vmem:[#allocation10 + $0x30] sm:$0xff]  ;;  %s2960_s8 = sld [smem:[#allocation3 + $0x3]]  ;;  %s3580_s19 = smov [#allocation12]  }
  0x3d   :  { %4755 = vst [vmem:[#allocation26_spill] sm:$0xff] %v3674_v14  ;;  %4756 = vst [vmem:[#allocation27_spill] sm:$0xff] %v3676_v15  ;;  %222 = vmatpush1.msra.mxu1 %v3670_v13  ;;  %v3684_v18 = vld [vmem:[#allocation10 + $0x18] sm:$0xff]  ;;  %152 = vmatprep.subr.mxu0 %v3668_v12  ;;  %v3688_v19 = vld [vmem:[#allocation10] sm:$0xff]  ;;  %s2968_s9 = sld [smem:[#allocation3 + $0x4]]  ;;  %s2925_s2 = sshll.u32 %s3580_s19, 4  ;;  %s2926_s2 = int_to_ptr.vmem [resolvable:$true] %s2925_s2 }
  0x3e   :  { %4757 = vst [vmem:[#allocation28_spill] sm:$0xff] %v3680_v16  ;;  %4758 = vst [vmem:[#allocation29_spill] sm:$0xff] %v3682_v17  ;;  %223 = vmatprep.subr.mxu1 %v3676_v15  ;;  %v3690_v20 = vld [vmem:[#allocation10 + $0x10] sm:$0xff]  ;;  %153 = vmatpush1.msra.mxu0 %v3674_v14  ;;  %v3694_v21 = vld [vmem:[#allocation9] sm:$0xff]  ;;  %s2976_s11 = sld [smem:[#allocation3 + $0x5]]  ;;  %s3538_s20 = scalar_lea.vmem %s2926_s2, 1024 }
  0x3f   :  { %4759 = vst [vmem:[#allocation30_spill] sm:$0xff] %v3684_v18  ;;  %4760 = vst [vmem:[#allocation31_spill] sm:$0xff] %v3688_v19  ;;  %224 = vmatpush1.msra.mxu1 %v3682_v17  ;;  %v3696_v22 = vld [vmem:[#allocation7 + $0x170] sm:$0xff]  ;;  %154 = vmatprep.subr.mxu0 %v3680_v16  ;;  %v3702_v23 = vld [vmem:[#allocation7 + $0x168] sm:$0xff]  ;;  %s2992_s17 = sld [smem:[#allocation3 + $0x7]]  ;;  %p3539_p13 = scmp.ne.s32.totalorder %s2926_s2, %s3538_s20 }
  0x40   :  { %4761 = vst [vmem:[#allocation32_spill] sm:$0xff] %v3690_v20  ;;  %4762 = vst [vmem:[#allocation33_spill] sm:$0xff] %v3696_v22  ;;  %225 = vmatprep.subr.mxu1 %v3684_v18  ;;  %155 = vmatpush1.msra.mxu0 %v3688_v19  ;;  %v3704_v24 = vld [vmem:[#allocation7 + $0x178] sm:$0xff]  ;;  %v3714_v26 = vld [vmem:[#allocation7 + $0x150] sm:$0xff]  ;;  %p266_p6 = scmp.ne.s32.totalorder %s2944_s3, 0  ;;  %p3543_p0 = scmp.lt.s32.totalorder %s2926_s2, %s2926_s2 }
  0x41   :  { %226 = vmatpush1.msra.mxu1 %v3690_v20  ;;  %2942 = vmatmul.mubr.msk.f32.vlgmr.msra.gmra.mxu0 %vm120_vm2, %v3694_v21  ;;  %v3709_v25 = vld [vmem:[#allocation7 + $0x158] sm:$0xff]  ;;  %v3716_v27 = vld [vmem:[#allocation7 + $0x160] sm:$0xff]  ;;  %v3726_v30 = vld [vmem:[#allocation7 + $0x148] sm:$0xff]  ;;  %p643_p7 = scmp.ne.s32.totalorder %s2952_s29, 0  ;;  %p3544_p1 = scmp.lt.s32.totalorder %s3538_s20, %s3538_s20 }
  0x42   :  { %321 = vmatprep.subr.mxu0 %v3696_v22  ;;  %3118 = vmatprep.subr.mxu1 %v4688_v1  ;;  %v3720_v28 = vld [vmem:[#allocation7 + $0x140] sm:$0xff]  ;;  %v3724_v29 = vld [vmem:[#allocation7 + $0x138] sm:$0xff]  ;;  %v3730_v31 = vld [vmem:[#allocation7 + $0x128] sm:$0xff]  ;;  %s466_s4 = scalar_select %p266_p6, 1, 0 }
  0x43   :  { %2943 = vmatmul.mubr.msk.f32.vlgmr.msra.gmra.mxu1 %vm120_vm2, %v3694_v21  ;;  %322 = vmatpush1.msra.mxu0 %v3702_v23  ;;  %v3734_v32 = vld [vmem:[#allocation7 + $0x120] sm:$0xff]  ;;  %v3736_v33 = vld [vmem:[#allocation7 + $0x130] sm:$0xff]  ;;  %v3744_v35 = vld [vmem:[#allocation7 + $0x108] sm:$0xff]  ;;  %s843_s30 = scalar_select %p643_p7, 1, 0 }
  0x44   :  { %3119 = vmatpush3.msra.mxu1 %v3704_v24  ;;  %323 = vmatprep.subr.mxu0 %v3709_v25  ;;  %v3740_v34 = vld [vmem:[#allocation7 + $0x110] sm:$0xff]  ;;  %v3746_v36 = vld [vmem:[#allocation7 + $0x118] sm:$0xff]  ;;  %v3756_v39 = vld [vmem:[#allocation7 + $0x100] sm:$0xff]  ;;  %p1036_p8 = scmp.ne.s32.totalorder %s2960_s8, 0  ;;  %p1429_p9 = scmp.ne.s32.totalorder %s2968_s9, 0 }
  0x45   :  { %3120 = vmatprep.subr.mxu1 %v4688_v1  ;;  %324 = vmatpush1.msra.mxu0 %v3714_v26  ;;  %v3750_v37 = vld [vmem:[#allocation7 + $0xf8] sm:$0xff]  ;;  %v3754_v38 = vld [vmem:[#allocation7 + $0xf0] sm:$0xff]  ;;  %v3760_v40 = vld [vmem:[#allocation7 + $0xe0] sm:$0xff]  ;;  %p1822_p10 = scmp.ne.s32.totalorder %s2976_s11, 0  ;;  %p2608_p12 = scmp.ne.s32.totalorder %s2992_s17, 0 }
  0x46   :  { %3121 = vmatpush3.msra.mxu1 %v3716_v27  ;;  %325 = vmatprep.subr.mxu0 %v3720_v28  ;;  %v3764_v41 = vld [vmem:[#allocation7 + $0xd8] sm:$0xff]  ;;  %v3766_v42 = vld [vmem:[#allocation7 + $0xe8] sm:$0xff]  ;;  %v3774_v44 = vld [vmem:[#allocation7 + $0xc0] sm:$0xff]  ;;  %s1236_s0 = scalar_select %p1036_p8, 1, 0 }
  0x47   :  { %3122 = vmatprep.subr.mxu1 %v4688_v1  ;;  %326 = vmatpush1.msra.mxu0 %v3724_v29  ;;  %v3770_v43 = vld [vmem:[#allocation7 + $0xc8] sm:$0xff]  ;;  %v3776_v45 = vld [vmem:[#allocation7 + $0xd0] sm:$0xff]  ;;  %v3786_v48 = vld [vmem:[#allocation7 + $0xb8] sm:$0xff]  ;;  %s1629_s10 = scalar_select %p1429_p9, 1, 0 }
  0x48   :  { %3123 = vmatpush3.msra.mxu1 %v3726_v30  ;;  %327 = vmatprep.subr.mxu0 %v3730_v31  ;;  %v3780_v46 = vld [vmem:[#allocation7 + $0xb0] sm:$0xff]  ;;  %v3784_v47 = vld [vmem:[#allocation7 + $0xa8] sm:$0xff]  ;;  %v3790_v49 = vld [vmem:[#allocation7 + $0x98] sm:$0xff]  ;;  %s2022_s12 = scalar_select %p1822_p10, 1, 0 }
  0x49   :  { %3124 = vmatprep.subr.mxu1 %v4688_v1  ;;  %328 = vmatpush1.msra.mxu0 %v3734_v32  ;;  %v3794_v50 = vld [vmem:[#allocation7 + $0x90] sm:$0xff]  ;;  %v3796_v51 = vld [vmem:[#allocation7 + $0xa0] sm:$0xff]  ;;  %v3804_v53 = vld [vmem:[#allocation7 + $0x78] sm:$0xff]  ;;  %s2808_s18 = scalar_select %p2608_p12, 1, 0 }
  0x4a   :  { %3125 = vmatpush3.msra.mxu1 %v3736_v33  ;;  %329 = vmatprep.subr.mxu0 %v3740_v34  ;;  %v3800_v52 = vld [vmem:[#allocation7 + $0x80] sm:$0xff]  ;;  %v3806_v54 = vld [vmem:[#allocation7 + $0x88] sm:$0xff]  ;;  %v3816_v57 = vld [vmem:[#allocation7 + $0x70] sm:$0xff]  ;;  %p3545_p2 = por %p3544_p1, %p3543_p0 }
  0x4b   :  { %3126 = vmatprep.subr.mxu1 %v4688_v1  ;;  %330 = vmatpush1.msra.mxu0 %v3744_v35  ;;  %v3810_v55 = vld [vmem:[#allocation7 + $0x68] sm:$0xff]  ;;  %v3814_v56 = vld [vmem:[#allocation7 + $0x60] sm:$0xff]  ;;  %v3820_v58 = vld [vmem:[#allocation7 + $0x50] sm:$0xff] }
  0x4c   :  { %3127 = vmatpush3.msra.mxu1 %v3746_v36  ;;  %331 = vmatprep.subr.mxu0 %v3750_v37  ;;  %4763 = vst [vmem:[#allocation34_spill] sm:$0xff] %v3820_v58  ;;  %v3824_v59 = vld [vmem:[#allocation7 + $0x48] sm:$0xff]  ;;  %v3826_v60 = vld [vmem:[#allocation7 + $0x58] sm:$0xff]  ;;  %v3834_v62 = vld [vmem:[#allocation7 + $0x30] sm:$0xff]  ;;  %p3546_p3 = pnand %p3545_p2, %p3539_p13 }
  0x4d   :  { %3128 = vmatprep.subr.mxu1 %v4688_v1  ;;  %332 = vmatpush1.msra.mxu0 %v3754_v38  ;;  %4764 = vst [vmem:[#allocation35_spill] sm:$0xff] %v3826_v60  ;;  %v3830_v61 = vld [vmem:[#allocation7 + $0x38] sm:$0xff]  ;;  %v3836_v63 = vld [vmem:[#allocation7 + $0x40] sm:$0xff]  ;;  %v3846_v2 = vld [vmem:[#allocation7 + $0x28] sm:$0xff] }
  0x4e   :  { %3129 = vmatpush3.msra.mxu1 %v3756_v39  ;;  %333 = vmatprep.subr.mxu0 %v3760_v40  ;;  %4765 = vst [vmem:[#allocation36_spill] sm:$0xff] %v3830_v61  ;;  %4766 = vst [vmem:[#allocation37_spill] sm:$0xff] %v3836_v63  ;;  %v3840_v0 = vld [vmem:[#allocation7 + $0x20] sm:$0xff]  ;;  %v3844_v3 = vld [vmem:[#allocation7 + $0x18] sm:$0xff] }
  0x4f   :  { %3130 = vmatprep.subr.mxu1 %v4688_v1  ;;  %334 = vmatpush1.msra.mxu0 %v3764_v41  ;;  %4767 = vst [vmem:[#allocation38_spill] sm:$0xff] %v3840_v0  ;;  %4768 = vst [vmem:[#allocation39_spill] sm:$0xff] %v3844_v3 }
  0x50   :  { %3131 = vmatpush3.msra.mxu1 %v3766_v42  ;;  %335 = vmatprep.subr.mxu0 %v3770_v43  ;;  %4769 = vst [vmem:[#allocation40_spill] sm:$0xff] %v3846_v2 }
  0x51   :  { %3132 = vmatprep.subr.mxu1 %v4688_v1  ;;  %336 = vmatpush1.msra.mxu0 %v3774_v44 }
  0x52   :  { %3133 = vmatpush3.msra.mxu1 %v3776_v45  ;;  %337 = vmatprep.subr.mxu0 %v3780_v46 }
  0x53   :  { %3134 = vmatprep.subr.mxu1 %v4688_v1  ;;  %338 = vmatpush1.msra.mxu0 %v3784_v47 }
  0x54   :  { %3135 = vmatpush3.msra.mxu1 %v3786_v48  ;;  %339 = vmatprep.subr.mxu0 %v3790_v49 }
  0x55   :  { %3136 = vmatprep.subr.mxu1 %v4688_v1  ;;  %340 = vmatpush1.msra.mxu0 %v3794_v50 }
  0x56   :  { %3137 = vmatpush3.msra.mxu1 %v3796_v51  ;;  %341 = vmatprep.subr.mxu0 %v3800_v52 }
  0x57   :  { %3138 = vmatprep.subr.mxu1 %v4688_v1  ;;  %342 = vmatpush1.msra.mxu0 %v3804_v53 }
  0x58   :  { %3139 = vmatpush3.msra.mxu1 %v3806_v54  ;;  %343 = vmatprep.subr.mxu0 %v3810_v55 }
  0x59   :  { %3140 = vmatprep.subr.mxu1 %v4688_v1  ;;  %344 = vmatpush1.msra.mxu0 %v3814_v56 }
  0x5a   :  { %3141 = vmatpush3.msra.mxu1 %v3816_v57  ;;  %345 = vmatprep.subr.mxu0 %v3820_v58  ;;  %v3850_v58 = vld [vmem:[#allocation7 + $0x8] sm:$0xff] }
  0x5b   :  { %3142 = vmatprep.subr.mxu1 %v4688_v1  ;;  %346 = vmatpush1.msra.mxu0 %v3824_v59  ;;  %4770 = vst [vmem:[#allocation41_spill] sm:$0xff] %v3850_v58 }
  0x5c   :  { %3143 = vmatpush3.msra.mxu1 %v3826_v60  ;;  %347 = vmatprep.subr.mxu0 %v3830_v61  ;;  %v3854_v60 = vld [vmem:[#allocation7] sm:$0xff]  ;;  %v3858_v61 = vld [vmem:[#allocation7 + $0x10] sm:$0xff] }
  0x5d   :  { %3144 = vmatprep.subr.mxu1 %v4688_v1  ;;  %348 = vmatpush1.msra.mxu0 %v3834_v62  ;;  %4771 = vst [vmem:[#allocation42_spill] sm:$0xff] %v3854_v60  ;;  %4772 = vst [vmem:[#allocation43_spill] sm:$0xff] %v3858_v61 }
  0x5e   :  { %3145 = vmatpush3.msra.mxu1 %v3836_v63  ;;  %349 = vmatprep.subr.mxu0 %v3840_v0 }
  0x5f   :  { %3146 = vmatprep.subr.mxu1 %v4688_v1  ;;  %350 = vmatpush1.msra.mxu0 %v3844_v3 }
  0x60   :  { %3147 = vmatpush3.msra.mxu1 %v3846_v2  ;;  %351 = vmatprep.subr.mxu0 %v3850_v58  ;;  %v4678_v58 = vmov 1.0  }
  0x61   :  { %3148 = vmatprep.subr.mxu1 %v4688_v1  ;;  %352 = vmatpush1.msra.mxu0 %v3854_v60 }
  0x62   :  { %385 = vmatprep.mubr.f32.mxu0 %v4688_v1  ;;  %3149 = vmatpush3.msra.mxu1 %v3858_v61 }
  0x63   :  { %3150 = vmatprep.mubr.msk.f32.mxu1 %vm3578_vm3, %v4688_v1  ;;  %521 = vmatprep.subr.mxu0 %v3650_v5 }
  0x64   :  { %592 = vmatprep.subr.mxu1 %v3654_v7 }
  0xc5   :  { %v269_v2 = vpop.xlane.xlu0 %268 }
  0xc6   :  { %vm270_vm4 = vcmp.eq.f32.partialorder %v3647_v4, %v269_v2 }
  0xc7   :  { %2946 = vmatmul.mubr.msk.f32.vlgmr.msra.gmra.mxu0 %vm270_vm4, %v4678_v58  ;;  %3151 = vmatmul.mubr.msk.f32.vlgmr.msra.gmra.mxu1 %vm270_vm4, %v4678_v58 }
  0xc8   :  { %522 = vmatpush1.msra.mxu0 %v3652_v6  ;;  %593 = vmatpush1.msra.mxu1 %v3660_v9 }
  0xc9   :  { %523 = vmatprep.subr.mxu0 %v3658_v8  ;;  %594 = vmatprep.subr.mxu1 %v3666_v11 }
  0xca   :  { %524 = vmatpush1.msra.mxu0 %v3662_v10  ;;  %595 = vmatpush1.msra.mxu1 %v3670_v13 }
  0xcb   :  { %525 = vmatprep.subr.mxu0 %v3668_v12  ;;  %596 = vmatprep.subr.mxu1 %v3676_v15  ;;  %v464_v12 = vld [vmem:[#allocation4 + $0x20] sm:$0xff] }
  0xcc   :  { %526 = vmatpush1.msra.mxu0 %v3674_v14  ;;  %597 = vmatpush1.msra.mxu1 %v3682_v17  ;;  %v463_v17 = vld [vmem:[#allocation4 + $0x18] sm:$0xff] }
  0xcd   :  { %527 = vmatprep.subr.mxu0 %v3680_v16  ;;  %598 = vmatprep.subr.mxu1 %v3684_v18  ;;  %v467_v16 = vstv %s466_s4 }
  0xce   :  { %528 = vmatpush1.msra.mxu0 %v3688_v19  ;;  %561 = vmatprep.mubr.f32.mxu0 %v4688_v1  ;;  %vm3890_vm5 = vcmp.eq.s32.totalorder %v467_v16, 1  ;;  %v4777_v19 = vld [vmem:[#allocation35_spill] sm:$0xff] }
  0xcf   :  { %599 = vmatpush1.msra.mxu1 %v3690_v20  ;;  %632 = vmatprep.mubr.f32.mxu1 %v4688_v1 }
  0xd0   :  { %698 = vmatprep.subr.mxu0 %v3696_v22  ;;  %3153 = vmatprep.subr.mxu1 %v4688_v1 }
 0x101   :  { %v190_v58 = vpop.f32.mrf.mxu0 }
 0x103   :  { %v261_v2 = vpop.f32.mrf.mxu1  ;;  %v192_v18 = vpop.f32.mrf.mxu0 }
 0x105   :  { %v263_v4 = vpop.f32.mrf.mxu1 }
 0x187   :  { %v387_v20 = vpop.f32.mrf.mxu0  ;;  %v458_v14 = vpop.f32.mrf.mxu1 }
 0x188   :  { %v469_v22 = vsel %vm3890_vm5, %v463_v17, %v387_v20  ;;  %v3901_v17 = vld [vmem:[%s4663_s5] ss:$0 sm:$0xff] }
 0x189   :  { %v472_v15 = vadd.f32 %v469_v22, %v190_v58  ;;  %v389_v1 = vpop.f32.mrf.mxu0  ;;  %v3152_v4 = vpop.f32.mrf.mxu1  ;;  %v486_v22 = vadd.f32 %v3901_v17, %v261_v2  ;;  %v4779_v2 = vld [vmem:[#allocation40_spill] sm:$0xff] }
 0x18a   :  { %v470_v10 = vsel %vm3890_vm5, %v464_v12, %v389_v1 }
 0x18b   :  { %v2948_v13 = vmul.f32 -1.442695, %v472_v15  ;;  %v479_v11 = vadd.f32 %v470_v10, %v192_v18  ;;  %v465_v15 = vld [vmem:[#allocation4 + $0x28] sm:$0xff] }
 0x18c   :  { %v471_v1 = vsel %vm3890_vm5, %v465_v15, %v458_v14  ;;  %v4776_v14 = vld [vmem:[#allocation34_spill] sm:$0xff] }
 0x18d   :  { %3378 = vpow2.f32 %v2948_v13  ;;  %v2949_v8 = vmul.f32 -1.442695, %v479_v11 }
 0x18f   :  { %3380 = vpow2.f32 %v2949_v8 }
 0x19a   :  { %v3379_v16 = vpop.eup %3378 }
 0x19b   :  { %v476_v9 = vadd.f32 1.0, %v3379_v16  ;;  %v4780_v16 = vld [vmem:[#allocation41_spill] sm:$0xff] }
 0x19c   :  { %v3381_v6 = vpop.eup %3380 }
 0x19d   :  { %3382 = vrcp.f32 %v476_v9  ;;  %v483_v20 = vadd.f32 1.0, %v3381_v6  ;;  %v4775_v6 = vmov 0.0  }
 0x19f   :  { %3384 = vrcp.f32 %v483_v20 }
 0x1aa   :  { %v3383_v58 = vpop.eup %3382 }
 0x1ab   :  { %v487_v4 = vmul.f32 %v3383_v58, %v486_v22  ;;  %v3983_v22 = vld [vmem:[%s4664_s6] ss:$0 sm:$0xff] }
 0x1ac   :  { %v3385_v10 = vpop.eup %3384  ;;  %4781 = vst [vmem:[#allocation34_spill] sm:$0xff] %v3983_v22 }
 0x1ad   :  { %v488_v8 = vadd.f32 %v487_v4, %v471_v1  ;;  %v490_v9 = vsub.f32 1.0, %v3385_v10  ;;  %v492_v13 = vmul.f32 %v3385_v10, %v3694_v21  ;;  %v4778_v21 = vld [vmem:[#allocation36_spill] sm:$0xff]  ;;  %v4783_v10 = vmov 1.0  }
 0x1af   :  { %3386 = vtanh.f32 %v488_v8 }
 0x1bc   :  { %v3387_v11 = vpop.eup %3386 }
 0x1bd   :  { %v491_v12 = vmul.f32 %v3387_v11, %v490_v9  ;;  %v4786_v9 = vld [vmem:[#allocation20_spill] sm:$0xff]  ;;  %v4787_v11 = vld [vmem:[#allocation23_spill] sm:$0xff] }
 0x1bf   :  { %v3907_v18 = vadd.f32 %v492_v13, %v491_v12  ;;  %v4788_v12 = vld [vmem:[#allocation22_spill] sm:$0xff]  ;;  %v4789_v13 = vld [vmem:[#allocation25_spill] sm:$0xff] }
 0x1c1   :  { %2950 = vmatmul.mubr.msk.f32.vlgmr.msra.gmra.mxu0 %vm120_vm2, %v3907_v18  ;;  %2951 = vmatmul.mubr.msk.f32.vlgmr.msra.gmra.mxu1 %vm120_vm2, %v3907_v18 }
 0x1c2   :  { %699 = vmatpush1.msra.mxu0 %v3702_v23  ;;  %3154 = vmatpush3.msra.mxu1 %v3704_v24 }
 0x1c3   :  { %700 = vmatprep.subr.mxu0 %v3709_v25  ;;  %3155 = vmatprep.subr.mxu1 %v4775_v6 }
 0x1c4   :  { %701 = vmatpush1.msra.mxu0 %v3714_v26  ;;  %3156 = vmatpush3.msra.mxu1 %v3716_v27 }
 0x1c5   :  { %702 = vmatprep.subr.mxu0 %v3720_v28  ;;  %3157 = vmatprep.subr.mxu1 %v4775_v6 }
 0x1c6   :  { %703 = vmatpush1.msra.mxu0 %v3724_v29  ;;  %3158 = vmatpush3.msra.mxu1 %v3726_v30 }
 0x1c7   :  { %704 = vmatprep.subr.mxu0 %v3730_v31  ;;  %3159 = vmatprep.subr.mxu1 %v4775_v6 }
 0x1c8   :  { %705 = vmatpush1.msra.mxu0 %v3734_v32  ;;  %3160 = vmatpush3.msra.mxu1 %v3736_v33 }
 0x1c9   :  { %706 = vmatprep.subr.mxu0 %v3740_v34  ;;  %3161 = vmatprep.subr.mxu1 %v4775_v6 }
 0x1ca   :  { %707 = vmatpush1.msra.mxu0 %v3744_v35  ;;  %3162 = vmatpush3.msra.mxu1 %v3746_v36 }
 0x1cb   :  { %708 = vmatprep.subr.mxu0 %v3750_v37  ;;  %3163 = vmatprep.subr.mxu1 %v4775_v6 }
 0x1cc   :  { %709 = vmatpush1.msra.mxu0 %v3754_v38  ;;  %3164 = vmatpush3.msra.mxu1 %v3756_v39 }
 0x1cd   :  { %710 = vmatprep.subr.mxu0 %v3760_v40  ;;  %3165 = vmatprep.subr.mxu1 %v4775_v6 }
 0x1ce   :  { %711 = vmatpush1.msra.mxu0 %v3764_v41  ;;  %3166 = vmatpush3.msra.mxu1 %v3766_v42 }
 0x1cf   :  { %712 = vmatprep.subr.mxu0 %v3770_v43  ;;  %3167 = vmatprep.subr.mxu1 %v4775_v6 }
 0x1d0   :  { %713 = vmatpush1.msra.mxu0 %v3774_v44  ;;  %3168 = vmatpush3.msra.mxu1 %v3776_v45 }
 0x1d1   :  { %714 = vmatprep.subr.mxu0 %v3780_v46  ;;  %3169 = vmatprep.subr.mxu1 %v4775_v6 }
 0x1d2   :  { %715 = vmatpush1.msra.mxu0 %v3784_v47  ;;  %3170 = vmatpush3.msra.mxu1 %v3786_v48 }
 0x1d3   :  { %716 = vmatprep.subr.mxu0 %v3790_v49  ;;  %3171 = vmatprep.subr.mxu1 %v4775_v6 }
 0x1d4   :  { %717 = vmatpush1.msra.mxu0 %v3794_v50  ;;  %3172 = vmatpush3.msra.mxu1 %v3796_v51 }
 0x1d5   :  { %718 = vmatprep.subr.mxu0 %v3800_v52  ;;  %3173 = vmatprep.subr.mxu1 %v4775_v6 }
 0x1d6   :  { %719 = vmatpush1.msra.mxu0 %v3804_v53  ;;  %3174 = vmatpush3.msra.mxu1 %v3806_v54 }
 0x1d7   :  { %720 = vmatprep.subr.mxu0 %v3810_v55  ;;  %3175 = vmatprep.subr.mxu1 %v4775_v6 }
 0x1d8   :  { %721 = vmatpush1.msra.mxu0 %v3814_v56  ;;  %3176 = vmatpush3.msra.mxu1 %v3816_v57 }
 0x1d9   :  { %722 = vmatprep.subr.mxu0 %v4776_v14  ;;  %3177 = vmatprep.subr.mxu1 %v4775_v6 }
 0x1da   :  { %723 = vmatpush1.msra.mxu0 %v3824_v59  ;;  %3178 = vmatpush3.msra.mxu1 %v4777_v19 }
 0x1db   :  { %724 = vmatprep.subr.mxu0 %v4778_v21  ;;  %3179 = vmatprep.subr.mxu1 %v4775_v6 }
 0x1dc   :  { %725 = vmatpush1.msra.mxu0 %v3834_v62  ;;  %3180 = vmatpush3.msra.mxu1 %v3836_v63 }
 0x1dd   :  { %726 = vmatprep.subr.mxu0 %v3840_v0  ;;  %3181 = vmatprep.subr.mxu1 %v4775_v6 }
 0x1de   :  { %727 = vmatpush1.msra.mxu0 %v3844_v3  ;;  %3182 = vmatpush3.msra.mxu1 %v4779_v2 }
 0x1df   :  { %3183 = vmatprep.subr.mxu1 %v4775_v6  ;;  %728 = vmatprep.subr.mxu0 %v4780_v16 }
 0x1e0   :  { %729 = vmatpush1.msra.mxu0 %v3854_v60  ;;  %762 = vmatprep.mubr.f32.mxu0 %v4775_v6 }
 0x1e1   :  { %3184 = vmatpush3.msra.mxu1 %v3858_v61  ;;  %3185 = vmatprep.mubr.msk.f32.mxu1 %vm3578_vm3, %v4775_v6 }
 0x1e2   :  { %914 = vmatprep.subr.mxu0 %v3650_v5  ;;  %985 = vmatprep.subr.mxu1 %v3654_v7  ;;  %v4784_v5 = vld [vmem:[#allocation19_spill] sm:$0xff]  ;;  %v4785_v7 = vld [vmem:[#allocation21_spill] sm:$0xff] }
 0x281   :  { %v634_v20 = vpop.f32.mrf.mxu1 }
 0x282   :  { %v863_v63 = vadd.f32 %v3901_v17, %v634_v20 }
 0x283   :  { %v636_v15 = vpop.f32.mrf.mxu1 }
 0x284   :  { %v639_v58 = vadd.f32 %v3983_v22, %v636_v15  ;;  %v4790_v15 = vld [vmem:[#allocation24_spill] sm:$0xff] }
 0x286   :  { %641 = vst [vmem:[#allocation12 + $0x8] sm:$0xff] %v639_v58  ;;  %v644_v1 = vsel %vm84_vm0, %v639_v58, -inf  ;;  %v4791_v58 = vld [vmem:[#allocation27_spill] sm:$0xff] }
 0x287   :  { %645 = vmax.xlane.f32.xlu0 %v644_v1 }
 0x310   :  { %v646_v8 = vpop.xlane.xlu0 %645 }
 0x311   :  { %vm647_vm6 = vcmp.eq.f32.partialorder %v644_v1, %v646_v8  ;;  %v4792_v1 = vld [vmem:[#allocation26_spill] sm:$0xff]  ;;  %v4793_v8 = vld [vmem:[#allocation29_spill] sm:$0xff] }
 0x312   :  { %2954 = vmatmul.mubr.msk.f32.vlgmr.msra.gmra.mxu0 %vm647_vm6, %v4783_v10  ;;  %3186 = vmatmul.mubr.msk.f32.vlgmr.msra.gmra.mxu1 %vm647_vm6, %v4783_v10  ;;  %v4794_v10 = vld [vmem:[#allocation28_spill] sm:$0xff] }
 0x313   :  { %915 = vmatpush1.msra.mxu0 %v4784_v5  ;;  %986 = vmatpush1.msra.mxu1 %v4785_v7  ;;  %v4795_v5 = vld [vmem:[#allocation30_spill] sm:$0xff]  ;;  %v4796_v7 = vld [vmem:[#allocation31_spill] sm:$0xff] }
 0x314   :  { %916 = vmatprep.subr.mxu0 %v4786_v9  ;;  %987 = vmatprep.subr.mxu1 %v4787_v11  ;;  %v4797_v9 = vld [vmem:[#allocation32_spill] sm:$0xff]  ;;  %v4798_v11 = vld [vmem:[#allocation33_spill] sm:$0xff] }
 0x315   :  { %917 = vmatpush1.msra.mxu0 %v4788_v12  ;;  %988 = vmatpush1.msra.mxu1 %v4789_v13  ;;  %v563_v12 = vpop.f32.mrf.mxu0  ;;  %v844_v13 = vstv %s843_s30 }
 0x316   :  { %918 = vmatprep.subr.mxu0 %v4790_v15  ;;  %989 = vmatprep.subr.mxu1 %v4791_v58  ;;  %v840_v15 = vld [vmem:[#allocation4 + $0x30] sm:$0xff]  ;;  %vm4008_vm7 = vcmp.eq.s32.totalorder %v844_v13, 1 }
 0x317   :  { %919 = vmatpush1.msra.mxu0 %v4792_v1  ;;  %990 = vmatpush1.msra.mxu1 %v4793_v8 }
 0x318   :  { %920 = vmatprep.subr.mxu0 %v4794_v10  ;;  %991 = vmatprep.subr.mxu1 %v4795_v5  ;;  %v565_v10 = vpop.f32.mrf.mxu0 }
 0x319   :  { %921 = vmatpush1.msra.mxu0 %v4796_v7  ;;  %954 = vmatprep.mubr.f32.mxu0 %v4775_v6 }
 0x31a   :  { %992 = vmatpush1.msra.mxu1 %v4797_v9  ;;  %1025 = vmatprep.mubr.f32.mxu1 %v4775_v6 }
 0x31b   :  { %1091 = vmatprep.subr.mxu0 %v4798_v11  ;;  %3188 = vmatprep.subr.mxu1 %v4775_v6  ;;  %v841_v11 = vld [vmem:[#allocation4 + $0x38] sm:$0xff] }
 0x3d2   :  { %v764_v1 = vpop.f32.mrf.mxu0  ;;  %v835_v8 = vpop.f32.mrf.mxu1 }
 0x3d3   :  { %v846_v5 = vsel %vm4008_vm7, %v840_v15, %v764_v1  ;;  %v842_v15 = vld [vmem:[#allocation4 + $0x40] sm:$0xff] }
 0x3d4   :  { %v849_v7 = vadd.f32 %v846_v5, %v563_v12  ;;  %v766_v9 = vpop.f32.mrf.mxu0  ;;  %v3187_v4 = vpop.f32.mrf.mxu1 }
 0x3d5   :  { %v847_v61 = vsel %vm4008_vm7, %v841_v11, %v766_v9  ;;  %v848_v4 = vsel %vm4008_vm7, %v842_v15, %v835_v8 }
 0x3d6   :  { %v2956_v22 = vmul.f32 -1.442695, %v849_v7  ;;  %v856_v60 = vadd.f32 %v847_v61, %v565_v10 }
 0x3d8   :  { %3388 = vpow2.f32 %v2956_v22  ;;  %v2957_v16 = vmul.f32 -1.442695, %v856_v60 }
 0x3da   :  { %3390 = vpow2.f32 %v2957_v16 }
 0x3e5   :  { %v3389_v13 = vpop.eup %3388 }
 0x3e6   :  { %v853_v2 = vadd.f32 1.0, %v3389_v13 }
 0x3e7   :  { %v3391_v3 = vpop.eup %3390 }
 0x3e8   :  { %3392 = vrcp.f32 %v853_v2  ;;  %v860_v0 = vadd.f32 1.0, %v3391_v3 }
 0x3ea   :  { %3394 = vrcp.f32 %v860_v0 }
 0x3f5   :  { %v3393_v12 = vpop.eup %3392 }
 0x3f6   :  { %v864_v1 = vmul.f32 %v3393_v12, %v863_v63  ;;  %v1235_v12 = vld [vmem:[#allocation4 + $0x58] sm:$0xff] }
 0x3f7   :  { %v3395_v22 = vpop.eup %3394 }
 0x3f8   :  { %v865_v5 = vadd.f32 %v864_v1, %v848_v4  ;;  %v867_v61 = vsub.f32 1.0, %v3395_v22  ;;  %v869_v10 = vmul.f32 %v3395_v22, %v3907_v18 }
 0x3fa   :  { %3396 = vtanh.f32 %v865_v5 }
 0x407   :  { %v3397_v60 = vpop.eup %3396 }
 0x408   :  { %v868_v16 = vmul.f32 %v3397_v60, %v867_v61 }
 0x40a   :  { %v4020_v2 = vadd.f32 %v869_v10, %v868_v16 }
 0x40c   :  { %2958 = vmatmul.mubr.msk.f32.vlgmr.msra.gmra.mxu0 %vm120_vm2, %v4020_v2  ;;  %2959 = vmatmul.mubr.msk.f32.vlgmr.msra.gmra.mxu1 %vm120_vm2, %v4020_v2 }
 0x40d   :  { %1092 = vmatpush1.msra.mxu0 %v3702_v23  ;;  %3189 = vmatpush3.msra.mxu1 %v3704_v24  ;;  %v4801_v23 = vld [vmem:[#allocation37_spill] sm:$0xff]  ;;  %v4802_v24 = vld [vmem:[#allocation38_spill] sm:$0xff] }
 0x40e   :  { %1093 = vmatprep.subr.mxu0 %v3709_v25  ;;  %3190 = vmatprep.subr.mxu1 %v4775_v6  ;;  %v4803_v25 = vld [vmem:[#allocation39_spill] sm:$0xff] }
 0x40f   :  { %1094 = vmatpush1.msra.mxu0 %v3714_v26  ;;  %3191 = vmatpush3.msra.mxu1 %v3716_v27  ;;  %v4804_v26 = vld [vmem:[#allocation40_spill] sm:$0xff]  ;;  %v4805_v27 = vld [vmem:[#allocation41_spill] sm:$0xff] }
 0x410   :  { %1095 = vmatprep.subr.mxu0 %v3720_v28  ;;  %3192 = vmatprep.subr.mxu1 %v4775_v6  ;;  %v4806_v28 = vld [vmem:[#allocation42_spill] sm:$0xff] }
 0x411   :  { %1096 = vmatpush1.msra.mxu0 %v3724_v29  ;;  %3193 = vmatpush3.msra.mxu1 %v3726_v30  ;;  %v4807_v29 = vld [vmem:[#allocation43_spill] sm:$0xff] }
 0x412   :  { %1097 = vmatprep.subr.mxu0 %v3730_v31  ;;  %3194 = vmatprep.subr.mxu1 %v4775_v6 }
 0x413   :  { %1098 = vmatpush1.msra.mxu0 %v3734_v32  ;;  %3195 = vmatpush3.msra.mxu1 %v3736_v33  ;;  %v4808_v32 = vld [vmem:[#allocation34_spill] sm:$0xff] }
 0x414   :  { %1099 = vmatprep.subr.mxu0 %v3740_v34  ;;  %3196 = vmatprep.subr.mxu1 %v4775_v6 }
 0x415   :  { %1100 = vmatpush1.msra.mxu0 %v3744_v35  ;;  %3197 = vmatpush3.msra.mxu1 %v3746_v36 }
 0x416   :  { %1101 = vmatprep.subr.mxu0 %v3750_v37  ;;  %3198 = vmatprep.subr.mxu1 %v4775_v6  ;;  %v4810_v37 = vmov 1.0  }
 0x417   :  { %1102 = vmatpush1.msra.mxu0 %v3754_v38  ;;  %3199 = vmatpush3.msra.mxu1 %v3756_v39  ;;  %v4100_v38 = vld [vmem:[#allocation10 + $0x68] sm:$0xff]  ;;  %v4102_v39 = vld [vmem:[#allocation10 + $0x78] sm:$0xff] }
 0x418   :  { %1103 = vmatprep.subr.mxu0 %v3760_v40  ;;  %3200 = vmatprep.subr.mxu1 %v4775_v6  ;;  %v4104_v40 = vld [vmem:[#allocation10 + $0x60] sm:$0xff] }
 0x419   :  { %1104 = vmatpush1.msra.mxu0 %v3764_v41  ;;  %3201 = vmatpush3.msra.mxu1 %v3766_v42  ;;  %4811 = vst [vmem:[#allocation35_spill] sm:$0xff] %v4104_v40  ;;  %v4108_v41 = vld [vmem:[#allocation10 + $0x70] sm:$0xff]  ;;  %v4110_v42 = vld [vmem:[#allocation10 + $0x48] sm:$0xff] }
 0x41a   :  { %1105 = vmatprep.subr.mxu0 %v3770_v43  ;;  %3202 = vmatprep.subr.mxu1 %v4775_v6  ;;  %4812 = vst [vmem:[#allocation36_spill] sm:$0xff] %v4108_v41  ;;  %4813 = vst [vmem:[#allocation19_spill] sm:$0xff] %v4110_v42  ;;  %v4112_v43 = vld [vmem:[#allocation10 + $0x58] sm:$0xff] }
 0x41b   :  { %1106 = vmatpush1.msra.mxu0 %v3774_v44  ;;  %3203 = vmatpush3.msra.mxu1 %v3776_v45  ;;  %4814 = vst [vmem:[#allocation21_spill] sm:$0xff] %v4112_v43  ;;  %v4116_v44 = vld [vmem:[#allocation10 + $0x40] sm:$0xff]  ;;  %v4118_v45 = vld [vmem:[#allocation10 + $0x50] sm:$0xff] }
 0x41c   :  { %1107 = vmatprep.subr.mxu0 %v3780_v46  ;;  %3204 = vmatprep.subr.mxu1 %v4775_v6  ;;  %4815 = vst [vmem:[#allocation20_spill] sm:$0xff] %v4116_v44  ;;  %4816 = vst [vmem:[#allocation23_spill] sm:$0xff] %v4118_v45  ;;  %v4120_v46 = vld [vmem:[#allocation10 + $0x28] sm:$0xff] }
 0x41d   :  { %1108 = vmatpush1.msra.mxu0 %v3784_v47  ;;  %3205 = vmatpush3.msra.mxu1 %v3786_v48  ;;  %4817 = vst [vmem:[#allocation22_spill] sm:$0xff] %v4120_v46  ;;  %v4124_v47 = vld [vmem:[#allocation10 + $0x38] sm:$0xff]  ;;  %v4126_v48 = vld [vmem:[#allocation10 + $0x20] sm:$0xff] }
 0x41e   :  { %1109 = vmatprep.subr.mxu0 %v3790_v49  ;;  %3206 = vmatprep.subr.mxu1 %v4775_v6  ;;  %4818 = vst [vmem:[#allocation25_spill] sm:$0xff] %v4124_v47  ;;  %4819 = vst [vmem:[#allocation24_spill] sm:$0xff] %v4126_v48  ;;  %v4128_v49 = vld [vmem:[#allocation10 + $0x30] sm:$0xff] }
 0x41f   :  { %1110 = vmatpush1.msra.mxu0 %v3794_v50  ;;  %3207 = vmatpush3.msra.mxu1 %v3796_v51  ;;  %4820 = vst [vmem:[#allocation27_spill] sm:$0xff] %v4128_v49  ;;  %v4132_v50 = vld [vmem:[#allocation10 + $0x8] sm:$0xff]  ;;  %v4134_v51 = vld [vmem:[#allocation10 + $0x18] sm:$0xff] }
 0x420   :  { %1111 = vmatprep.subr.mxu0 %v3800_v52  ;;  %3208 = vmatprep.subr.mxu1 %v4775_v6  ;;  %4821 = vst [vmem:[#allocation26_spill] sm:$0xff] %v4132_v50  ;;  %4822 = vst [vmem:[#allocation29_spill] sm:$0xff] %v4134_v51  ;;  %v4138_v52 = vld [vmem:[#allocation10] sm:$0xff] }
 0x421   :  { %1112 = vmatpush1.msra.mxu0 %v3804_v53  ;;  %3209 = vmatpush3.msra.mxu1 %v3806_v54  ;;  %4823 = vst [vmem:[#allocation28_spill] sm:$0xff] %v4138_v52  ;;  %v4140_v53 = vld [vmem:[#allocation10 + $0x10] sm:$0xff] }
 0x422   :  { %1113 = vmatprep.subr.mxu0 %v3810_v55  ;;  %3210 = vmatprep.subr.mxu1 %v4775_v6  ;;  %4824 = vst [vmem:[#allocation30_spill] sm:$0xff] %v4140_v53  ;;  %v1237_v55 = vstv %s1236_s0 }
 0x423   :  { %1114 = vmatpush1.msra.mxu0 %v3814_v56  ;;  %3211 = vmatpush3.msra.mxu1 %v3816_v57  ;;  %v1233_v57 = vld [vmem:[#allocation4 + $0x48] sm:$0xff]  ;;  %vm4149_vm9 = vcmp.eq.s32.totalorder %v1237_v55, 1  ;;  %v4207_v55 = vld [vmem:[#allocation7 + $0x110] sm:$0xff] }
 0x424   :  { %1115 = vmatprep.subr.mxu0 %v4776_v14  ;;  %3212 = vmatprep.subr.mxu1 %v4775_v6  ;;  %v1234_v14 = vld [vmem:[#allocation4 + $0x50] sm:$0xff] }
 0x425   :  { %1116 = vmatpush1.msra.mxu0 %v3824_v59  ;;  %3213 = vmatpush3.msra.mxu1 %v4777_v19  ;;  %v4217_v59 = vld [vmem:[#allocation7 + $0xf8] sm:$0xff] }
 0x426   :  { %1117 = vmatprep.subr.mxu0 %v4778_v21  ;;  %3214 = vmatprep.subr.mxu1 %v4775_v6 }
 0x427   :  { %1118 = vmatpush1.msra.mxu0 %v3834_v62  ;;  %3215 = vmatpush3.msra.mxu1 %v4801_v23 }
 0x428   :  { %1119 = vmatprep.subr.mxu0 %v4802_v24  ;;  %3216 = vmatprep.subr.mxu1 %v4775_v6 }
 0x429   :  { %1120 = vmatpush1.msra.mxu0 %v4803_v25  ;;  %3217 = vmatpush3.msra.mxu1 %v4804_v26  ;;  %v4171_v25 = vld [vmem:[#allocation7 + $0x170] sm:$0xff]  ;;  %v4173_v26 = vld [vmem:[#allocation7 + $0x168] sm:$0xff] }
 0x42a   :  { %3218 = vmatprep.subr.mxu1 %v4775_v6  ;;  %1121 = vmatprep.subr.mxu0 %v4805_v27  ;;  %4827 = vst [vmem:[#allocation31_spill] sm:$0xff] %v4171_v25  ;;  %v4175_v27 = vld [vmem:[#allocation7 + $0x178] sm:$0xff] }
 0x42b   :  { %1122 = vmatpush1.msra.mxu0 %v4806_v28  ;;  %1155 = vmatprep.mubr.f32.mxu0 %v4775_v6  ;;  %v4181_v28 = vld [vmem:[#allocation7 + $0x150] sm:$0xff] }
 0x42c   :  { %3219 = vmatpush3.msra.mxu1 %v4807_v29  ;;  %3220 = vmatprep.mubr.msk.f32.mxu1 %vm3578_vm3, %v4775_v6  ;;  %v4183_v29 = vld [vmem:[#allocation7 + $0x160] sm:$0xff] }
 0x42d   :  { %1307 = vmatprep.subr.mxu0 %v4100_v38  ;;  %1378 = vmatprep.subr.mxu1 %v4102_v39 }
 0x4cc   :  { %v4091_v30 = vpop.f32.mrf.mxu1  ;;  %v956_v54 = vpop.f32.mrf.mxu0 }
 0x4cd   :  { %v1256_v15 = vadd.f32 %v3901_v17, %v4091_v30  ;;  %v4187_v30 = vld [vmem:[#allocation7 + $0x140] sm:$0xff] }
 0x4ce   :  { %v1029_v31 = vpop.f32.mrf.mxu1  ;;  %v958_v56 = vpop.f32.mrf.mxu0 }
 0x4cf   :  { %v1032_v33 = vadd.f32 %v4808_v32, %v1029_v31  ;;  %v4189_v31 = vld [vmem:[#allocation7 + $0x148] sm:$0xff] }
 0x4d1   :  { %1034 = vst [vmem:[#allocation12 + $0x10] sm:$0xff] %v1032_v33  ;;  %v1037_v35 = vsel %vm84_vm0, %v1032_v33, -inf  ;;  %v4193_v33 = vld [vmem:[#allocation7 + $0x138] sm:$0xff] }
 0x4d2   :  { %1038 = vmax.xlane.f32.xlu1 %v1037_v35 }
 0x55b   :  { %v1039_v36 = vpop.xlane.xlu1 %1038 }
 0x55c   :  { %vm1040_vm8 = vcmp.eq.f32.partialorder %v1037_v35, %v1039_v36  ;;  %v4197_v35 = vld [vmem:[#allocation7 + $0x128] sm:$0xff]  ;;  %v4199_v36 = vld [vmem:[#allocation7 + $0x130] sm:$0xff] }
 0x55d   :  { %2962 = vmatmul.mubr.msk.f32.vlgmr.msra.gmra.mxu0 %vm1040_vm8, %v4810_v37  ;;  %3221 = vmatmul.mubr.msk.f32.vlgmr.msra.gmra.mxu1 %vm1040_vm8, %v4810_v37 }
 0x55e   :  { %1347 = vmatprep.mubr.f32.mxu0 %v4775_v6  ;;  %1418 = vmatprep.mubr.f32.mxu1 %v4775_v6 }
 0x55f   :  { %1308 = vmatpush1.msra.mxu0 %v4104_v40  ;;  %1379 = vmatpush1.msra.mxu1 %v4108_v41 }
 0x560   :  { %1309 = vmatprep.subr.mxu0 %v4110_v42  ;;  %1380 = vmatprep.subr.mxu1 %v4112_v43 }
 0x561   :  { %1310 = vmatpush1.msra.mxu0 %v4116_v44  ;;  %1381 = vmatpush1.msra.mxu1 %v4118_v45 }
 0x562   :  { %1311 = vmatprep.subr.mxu0 %v4120_v46  ;;  %1382 = vmatprep.subr.mxu1 %v4124_v47 }
 0x563   :  { %1312 = vmatpush1.msra.mxu0 %v4126_v48  ;;  %1383 = vmatpush1.msra.mxu1 %v4128_v49 }
 0x564   :  { %1313 = vmatprep.subr.mxu0 %v4132_v50  ;;  %1384 = vmatprep.subr.mxu1 %v4134_v51 }
 0x565   :  { %1314 = vmatpush1.msra.mxu0 %v4138_v52  ;;  %1385 = vmatpush1.msra.mxu1 %v4140_v53 }
 0x566   :  { %3223 = vmatprep.subr.mxu1 %v4775_v6  ;;  %1484 = vmatprep.subr.mxu0 %v4171_v25 }
 0x61d   :  { %v1157_v62 = vpop.f32.mrf.mxu0  ;;  %v1228_v63 = vpop.f32.mrf.mxu1 }
 0x61e   :  { %v1239_v0 = vsel %vm4149_vm9, %v1233_v57, %v1157_v62  ;;  %v1241_v5 = vsel %vm4149_vm9, %v1235_v12, %v1228_v63  ;;  %v4213_v57 = vld [vmem:[#allocation7 + $0x108] sm:$0xff]  ;;  %v4219_v62 = vld [vmem:[#allocation7 + $0x100] sm:$0xff]  ;;  %v4223_v63 = vld [vmem:[#allocation7 + $0xf0] sm:$0xff] }
 0x61f   :  { %v1242_v3 = vadd.f32 %v1239_v0, %v956_v54  ;;  %v1159_v18 = vpop.f32.mrf.mxu0  ;;  %v3222_v19 = vpop.f32.mrf.mxu1  ;;  %v4203_v54 = vld [vmem:[#allocation7 + $0x120] sm:$0xff]  ;;  %v4273_v12 = vld [vmem:[#allocation7 + $0x78] sm:$0xff] }
 0x620   :  { %v1240_v20 = vsel %vm4149_vm9, %v1234_v14, %v1159_v18  ;;  %v4227_v0 = vld [vmem:[#allocation7 + $0xe0] sm:$0xff]  ;;  %v4233_v18 = vld [vmem:[#allocation7 + $0xd8] sm:$0xff]  ;;  %v4237_v14 = vld [vmem:[#allocation7 + $0xc8] sm:$0xff] }
 0x621   :  { %v2964_v21 = vmul.f32 -1.442695, %v1242_v3  ;;  %v1249_v58 = vadd.f32 %v1240_v20, %v958_v56  ;;  %v4209_v56 = vld [vmem:[#allocation7 + $0x118] sm:$0xff]  ;;  %v4229_v3 = vld [vmem:[#allocation7 + $0xe8] sm:$0xff]  ;;  %v4239_v19 = vld [vmem:[#allocation7 + $0xd0] sm:$0xff] }
 0x622   :  { %v4247_v20 = vld [vmem:[#allocation7 + $0xb0] sm:$0xff] }
 0x623   :  { %3398 = vpow2.f32 %v2964_v21  ;;  %v2965_v8 = vmul.f32 -1.442695, %v1249_v58  ;;  %v4243_v21 = vld [vmem:[#allocation7 + $0xc0] sm:$0xff]  ;;  %v4249_v58 = vld [vmem:[#allocation7 + $0xb8] sm:$0xff] }
 0x625   :  { %3400 = vpow2.f32 %v2965_v8  ;;  %v4253_v8 = vld [vmem:[#allocation7 + $0xa8] sm:$0xff] }
 0x630   :  { %v3399_v7 = vpop.eup %3398 }
 0x631   :  { %v1246_v9 = vadd.f32 1.0, %v3399_v7  ;;  %v4257_v7 = vld [vmem:[#allocation7 + $0x98] sm:$0xff] }
 0x632   :  { %v3401_v11 = vpop.eup %3400 }
 0x633   :  { %3402 = vrcp.f32 %v1246_v9  ;;  %v1253_v13 = vadd.f32 1.0, %v3401_v11  ;;  %v4259_v9 = vld [vmem:[#allocation7 + $0xa0] sm:$0xff]  ;;  %v4263_v11 = vld [vmem:[#allocation7 + $0x90] sm:$0xff] }
 0x635   :  { %3404 = vrcp.f32 %v1253_v13  ;;  %v4267_v13 = vld [vmem:[#allocation7 + $0x80] sm:$0xff] }
 0x640   :  { %v3403_v1 = vpop.eup %3402 }
 0x641   :  { %v1257_v4 = vmul.f32 %v3403_v1, %v1256_v15  ;;  %v4269_v15 = vld [vmem:[#allocation7 + $0x88] sm:$0xff] }
 0x642   :  { %v3405_v61 = vpop.eup %3404  ;;  %v4277_v1 = vld [vmem:[#allocation7 + $0x68] sm:$0xff] }
 0x643   :  { %v1258_v22 = vadd.f32 %v1257_v4, %v1241_v5  ;;  %v1260_v60 = vsub.f32 1.0, %v3405_v61  ;;  %v1262_v23 = vmul.f32 %v3405_v61, %v4020_v2  ;;  %v4179_v2 = vld [vmem:[#allocation7 + $0x158] sm:$0xff]  ;;  %4828 = vst [vmem:[#allocation32_spill] sm:$0xff] %v4277_v1  ;;  %v4279_v4 = vld [vmem:[#allocation7 + $0x70] sm:$0xff]  ;;  %v4283_v5 = vld [vmem:[#allocation7 + $0x60] sm:$0xff] }
 0x644   :  { %4829 = vst [vmem:[#allocation33_spill] sm:$0xff] %v4279_v4  ;;  %4830 = vst [vmem:[#allocation37_spill] sm:$0xff] %v4283_v5  ;;  %v4289_v61 = vld [vmem:[#allocation7 + $0x58] sm:$0xff] }
 0x645   :  { %3406 = vtanh.f32 %v1258_v22  ;;  %v4287_v22 = vld [vmem:[#allocation7 + $0x50] sm:$0xff]  ;;  %4831 = vst [vmem:[#allocation38_spill] sm:$0xff] %v4289_v61 }
 0x652   :  { %v3407_v16 = vpop.eup %3406 }
 0x653   :  { %v1261_v10 = vmul.f32 %v3407_v16, %v1260_v60  ;;  %v4293_v60 = vld [vmem:[#allocation7 + $0x48] sm:$0xff]  ;;  %v4297_v16 = vld [vmem:[#allocation7 + $0x38] sm:$0xff] }
 0x654   :  { %4832 = vst [vmem:[#allocation39_spill] sm:$0xff] %v4293_v60  ;;  %4833 = vst [vmem:[#allocation40_spill] sm:$0xff] %v4297_v16 }
 0x655   :  { %v4162_v24 = vadd.f32 %v1262_v23, %v1261_v10  ;;  %v4299_v10 = vld [vmem:[#allocation7 + $0x40] sm:$0xff]  ;;  %v4303_v23 = vld [vmem:[#allocation7 + $0x30] sm:$0xff] }
 0x656   :  { %4834 = vst [vmem:[#allocation41_spill] sm:$0xff] %v4299_v10  ;;  %4835 = vst [vmem:[#allocation42_spill] sm:$0xff] %v4303_v23 }
 0x657   :  { %2966 = vmatmul.mubr.msk.f32.vlgmr.msra.gmra.mxu0 %vm120_vm2, %v4162_v24  ;;  %2967 = vmatmul.mubr.msk.f32.vlgmr.msra.gmra.mxu1 %vm120_vm2, %v4162_v24 }
 0x658   :  { %1548 = vmatprep.mubr.f32.mxu0 %v4775_v6  ;;  %3255 = vmatprep.mubr.msk.f32.mxu1 %vm3578_vm3, %v4775_v6 }
 0x659   :  { %3224 = vmatpush3.msra.mxu1 %v4175_v27  ;;  %1485 = vmatpush1.msra.mxu0 %v4173_v26 }
 0x65a   :  { %3225 = vmatprep.subr.mxu1 %v4775_v6  ;;  %1486 = vmatprep.subr.mxu0 %v4179_v2 }
 0x65b   :  { %3226 = vmatpush3.msra.mxu1 %v4183_v29  ;;  %1487 = vmatpush1.msra.mxu0 %v4181_v28 }
 0x65c   :  { %3227 = vmatprep.subr.mxu1 %v4775_v6  ;;  %1488 = vmatprep.subr.mxu0 %v4187_v30 }
 0x65d   :  { %3228 = vmatpush3.msra.mxu1 %v4189_v31  ;;  %1489 = vmatpush1.msra.mxu0 %v4193_v33 }
 0x65e   :  { %3229 = vmatprep.subr.mxu1 %v4775_v6  ;;  %1490 = vmatprep.subr.mxu0 %v4197_v35 }
 0x65f   :  { %3230 = vmatpush3.msra.mxu1 %v4199_v36  ;;  %1491 = vmatpush1.msra.mxu0 %v4203_v54 }
 0x660   :  { %3231 = vmatprep.subr.mxu1 %v4775_v6  ;;  %1492 = vmatprep.subr.mxu0 %v4207_v55 }
 0x661   :  { %3232 = vmatpush3.msra.mxu1 %v4209_v56  ;;  %1493 = vmatpush1.msra.mxu0 %v4213_v57 }
 0x662   :  { %3233 = vmatprep.subr.mxu1 %v4775_v6  ;;  %1494 = vmatprep.subr.mxu0 %v4217_v59 }
 0x663   :  { %3234 = vmatpush3.msra.mxu1 %v4219_v62  ;;  %1495 = vmatpush1.msra.mxu0 %v4223_v63 }
 0x664   :  { %3235 = vmatprep.subr.mxu1 %v4775_v6  ;;  %1496 = vmatprep.subr.mxu0 %v4227_v0 }
 0x665   :  { %3236 = vmatpush3.msra.mxu1 %v4229_v3  ;;  %1497 = vmatpush1.msra.mxu0 %v4233_v18 }
 0x666   :  { %3237 = vmatprep.subr.mxu1 %v4775_v6  ;;  %1498 = vmatprep.subr.mxu0 %v4237_v14 }
 0x667   :  { %3238 = vmatpush3.msra.mxu1 %v4239_v19  ;;  %1499 = vmatpush1.msra.mxu0 %v4243_v21 }
 0x668   :  { %3239 = vmatprep.subr.mxu1 %v4775_v6  ;;  %1500 = vmatprep.subr.mxu0 %v4247_v20 }
 0x669   :  { %3240 = vmatpush3.msra.mxu1 %v4249_v58  ;;  %1501 = vmatpush1.msra.mxu0 %v4253_v8 }
 0x66a   :  { %3241 = vmatprep.subr.mxu1 %v4775_v6  ;;  %1502 = vmatprep.subr.mxu0 %v4257_v7 }
 0x66b   :  { %3242 = vmatpush3.msra.mxu1 %v4259_v9  ;;  %1503 = vmatpush1.msra.mxu0 %v4263_v11 }
 0x66c   :  { %3243 = vmatprep.subr.mxu1 %v4775_v6  ;;  %1504 = vmatprep.subr.mxu0 %v4267_v13 }
 0x66d   :  { %3244 = vmatpush3.msra.mxu1 %v4269_v15  ;;  %1505 = vmatpush1.msra.mxu0 %v4273_v12 }
 0x66e   :  { %3245 = vmatprep.subr.mxu1 %v4775_v6  ;;  %1506 = vmatprep.subr.mxu0 %v4277_v1  ;;  %v4309_v1 = vld [vmem:[#allocation7 + $0x28] sm:$0xff] }
 0x66f   :  { %3246 = vmatpush3.msra.mxu1 %v4279_v4  ;;  %1507 = vmatpush1.msra.mxu0 %v4283_v5  ;;  %v4307_v4 = vld [vmem:[#allocation7 + $0x20] sm:$0xff]  ;;  %4837 = vst [vmem:[#allocation34_spill] sm:$0xff] %v4309_v1  ;;  %v4313_v5 = vld [vmem:[#allocation7 + $0x18] sm:$0xff] }
 0x670   :  { %3247 = vmatprep.subr.mxu1 %v4775_v6  ;;  %1508 = vmatprep.subr.mxu0 %v4287_v22  ;;  %4836 = vst [vmem:[#allocation43_spill] sm:$0xff] %v4307_v4  ;;  %4838 = vst [vmem:[#allocation44_spill] sm:$0xff] %v4313_v5 }
 0x671   :  { %3248 = vmatpush3.msra.mxu1 %v4289_v61  ;;  %1509 = vmatpush1.msra.mxu0 %v4293_v60 }
 0x672   :  { %3249 = vmatprep.subr.mxu1 %v4775_v6  ;;  %1510 = vmatprep.subr.mxu0 %v4297_v16 }
 0x673   :  { %3250 = vmatpush3.msra.mxu1 %v4299_v10  ;;  %1511 = vmatpush1.msra.mxu0 %v4303_v23  ;;  %v4324_v23 = vld [vmem:[#allocation7 + $0x8] sm:$0xff] }
 0x674   :  { %3251 = vmatprep.subr.mxu1 %v4775_v6  ;;  %1512 = vmatprep.subr.mxu0 %v4307_v4  ;;  %4839 = vst [vmem:[#allocation45_spill] sm:$0xff] %v4324_v23  ;;  %v4327_v4 = vld [vmem:[#allocation7] sm:$0xff] }
 0x675   :  { %3252 = vmatpush3.msra.mxu1 %v4309_v1  ;;  %1513 = vmatpush1.msra.mxu0 %v4313_v5  ;;  %4840 = vst [vmem:[#allocation46_spill] sm:$0xff] %v4327_v4  ;;  %v4329_v1 = vld [vmem:[#allocation7 + $0x10] sm:$0xff] }
 0x676   :  { %3253 = vmatprep.subr.mxu1 %v4775_v6  ;;  %1514 = vmatprep.subr.mxu0 %v4324_v23  ;;  %4841 = vst [vmem:[#allocation47_spill] sm:$0xff] %v4329_v1 }
 0x677   :  { %1515 = vmatpush1.msra.mxu0 %v4327_v4  ;;  %3254 = vmatpush3.msra.mxu1 %v4329_v1 }
 0x678   :  { %1700 = vmatprep.subr.mxu0 %v4100_v38  ;;  %1771 = vmatprep.subr.mxu1 %v4102_v39 }
 0x717   :  { %v1420_v61 = vpop.f32.mrf.mxu1 }
 0x718   :  { %v1649_v34 = vadd.f32 %v3901_v17, %v1420_v61  ;;  %v4844_v17 = vld [vmem:[#allocation32_spill] sm:$0xff]  ;;  %v4852_v61 = vld [vmem:[#allocation43_spill] sm:$0xff] }
 0x719   :  { %v1422_v60 = vpop.f32.mrf.mxu1 }
 0x71a   :  { %v1425_v16 = vadd.f32 %v4808_v32, %v1422_v60 }
 0x71c   :  { %1427 = vst [vmem:[#allocation12 + $0x18] sm:$0xff] %v1425_v16  ;;  %v1430_v10 = vsel %vm84_vm0, %v1425_v16, -inf  ;;  %v1349_v16 = vpop.f32.mrf.mxu0 }
 0x71d   :  { %1431 = vmax.xlane.f32.xlu1 %v1430_v10 }
 0x7a6   :  { %v1432_v60 = vpop.xlane.xlu1 %1431 }
 0x7a7   :  { %vm1433_vm10 = vcmp.eq.f32.partialorder %v1430_v10, %v1432_v60  ;;  %v1630_v10 = vstv %s1629_s10  ;;  %v1351_v60 = vpop.f32.mrf.mxu0 }
 0x7a8   :  { %2970 = vmatmul.mubr.msk.f32.vlgmr.msra.gmra.mxu0 %vm1433_vm10, %v4810_v37  ;;  %3256 = vmatmul.mubr.msk.f32.vlgmr.msra.gmra.mxu1 %vm1433_vm10, %v4810_v37  ;;  %vm4355_vm11 = vcmp.eq.s32.totalorder %v1630_v10, 1 }
 0x7a9   :  { %1701 = vmatpush1.msra.mxu0 %v4104_v40  ;;  %1772 = vmatpush1.msra.mxu1 %v4108_v41 }
 0x7aa   :  { %1702 = vmatprep.subr.mxu0 %v4110_v42  ;;  %1773 = vmatprep.subr.mxu1 %v4112_v43 }
 0x7ab   :  { %1703 = vmatpush1.msra.mxu0 %v4116_v44  ;;  %1774 = vmatpush1.msra.mxu1 %v4118_v45 }
 0x7ac   :  { %1704 = vmatprep.subr.mxu0 %v4120_v46  ;;  %1775 = vmatprep.subr.mxu1 %v4124_v47  ;;  %v1627_v47 = vld [vmem:[#allocation4 + $0x68] sm:$0xff] }
 0x7ad   :  { %1705 = vmatpush1.msra.mxu0 %v4126_v48  ;;  %1776 = vmatpush1.msra.mxu1 %v4128_v49 }
 0x7ae   :  { %1706 = vmatprep.subr.mxu0 %v4132_v50  ;;  %1777 = vmatprep.subr.mxu1 %v4134_v51  ;;  %v1626_v50 = vld [vmem:[#allocation4 + $0x60] sm:$0xff]  ;;  %v4849_v51 = vld [vmem:[#allocation40_spill] sm:$0xff] }
 0x7af   :  { %1707 = vmatpush1.msra.mxu0 %v4138_v52  ;;  %1740 = vmatprep.mubr.f32.mxu0 %v4775_v6 }
 0x7b0   :  { %1778 = vmatpush1.msra.mxu1 %v4140_v53  ;;  %1811 = vmatprep.mubr.f32.mxu1 %v4775_v6 }
 0x7b1   :  { %1877 = vmatprep.subr.mxu0 %v4171_v25  ;;  %3258 = vmatprep.subr.mxu1 %v4775_v6 }
 0x868   :  { %v1550_v52 = vpop.f32.mrf.mxu0  ;;  %v1621_v49 = vpop.f32.mrf.mxu1 }
 0x869   :  { %v1632_v53 = vsel %vm4355_vm11, %v1626_v50, %v1550_v52  ;;  %v1628_v50 = vld [vmem:[#allocation4 + $0x70] sm:$0xff] }
 0x86a   :  { %v1635_v48 = vadd.f32 %v1632_v53, %v1349_v16  ;;  %v1552_v25 = vpop.f32.mrf.mxu0  ;;  %v3257_v46 = vpop.f32.mrf.mxu1  ;;  %v4853_v16 = vld [vmem:[#allocation34_spill] sm:$0xff] }
 0x86b   :  { %v1633_v44 = vsel %vm4355_vm11, %v1627_v47, %v1552_v25  ;;  %v1634_v46 = vsel %vm4355_vm11, %v1628_v50, %v1621_v49  ;;  %v4848_v49 = vld [vmem:[#allocation38_spill] sm:$0xff]  ;;  %v4851_v25 = vld [vmem:[#allocation41_spill] sm:$0xff] }
 0x86c   :  { %v2972_v45 = vmul.f32 -1.442695, %v1635_v48  ;;  %v1642_v43 = vadd.f32 %v1633_v44, %v1351_v60 }
 0x86e   :  { %3408 = vpow2.f32 %v2972_v45  ;;  %v2973_v42 = vmul.f32 -1.442695, %v1642_v43 }
 0x870   :  { %3410 = vpow2.f32 %v2973_v42 }
 0x87b   :  { %v3409_v10 = vpop.eup %3408 }
 0x87c   :  { %v1639_v41 = vadd.f32 1.0, %v3409_v10 }
 0x87d   :  { %v3411_v40 = vpop.eup %3410 }
 0x87e   :  { %3412 = vrcp.f32 %v1639_v41  ;;  %v1646_v37 = vadd.f32 1.0, %v3411_v40  ;;  %v4847_v40 = vld [vmem:[#allocation39_spill] sm:$0xff] }
 0x880   :  { %3414 = vrcp.f32 %v1646_v37  ;;  %v4846_v37 = vld [vmem:[#allocation33_spill] sm:$0xff] }
 0x88b   :  { %v3413_v52 = vpop.eup %3412 }
 0x88c   :  { %v1650_v53 = vmul.f32 %v3413_v52, %v1649_v34  ;;  %v4845_v34 = vld [vmem:[#allocation37_spill] sm:$0xff] }
 0x88d   :  { %v3415_v45 = vpop.eup %3414 }
 0x88e   :  { %v1651_v48 = vadd.f32 %v1650_v53, %v1634_v46  ;;  %v1653_v44 = vsub.f32 1.0, %v3415_v45  ;;  %v1655_v47 = vmul.f32 %v3415_v45, %v4162_v24  ;;  %v4850_v24 = vld [vmem:[#allocation42_spill] sm:$0xff]  ;;  %v4856_v45 = vld [vmem:[#allocation35_spill] sm:$0xff] }
 0x890   :  { %3416 = vtanh.f32 %v1651_v48  ;;  %v4855_v48 = vmov 1.0  }
 0x89d   :  { %v3417_v43 = vpop.eup %3416 }
 0x89e   :  { %v1654_v42 = vmul.f32 %v3417_v43, %v1653_v44  ;;  %v4859_v44 = vld [vmem:[#allocation21_spill] sm:$0xff]  ;;  %v4861_v43 = vld [vmem:[#allocation23_spill] sm:$0xff] }
 0x8a0   :  { %v4367_v41 = vadd.f32 %v1655_v47, %v1654_v42  ;;  %v4862_v42 = vld [vmem:[#allocation22_spill] sm:$0xff]  ;;  %v4863_v47 = vld [vmem:[#allocation25_spill] sm:$0xff] }
 0x8a2   :  { %2974 = vmatmul.mubr.msk.f32.vlgmr.msra.gmra.mxu0 %vm120_vm2, %v4367_v41  ;;  %2975 = vmatmul.mubr.msk.f32.vlgmr.msra.gmra.mxu1 %vm120_vm2, %v4367_v41 }
 0x8a3   :  { %1878 = vmatpush1.msra.mxu0 %v4173_v26  ;;  %3259 = vmatpush3.msra.mxu1 %v4175_v27 }
 0x8a4   :  { %1879 = vmatprep.subr.mxu0 %v4179_v2  ;;  %3260 = vmatprep.subr.mxu1 %v4775_v6 }
 0x8a5   :  { %1880 = vmatpush1.msra.mxu0 %v4181_v28  ;;  %3261 = vmatpush3.msra.mxu1 %v4183_v29 }
 0x8a6   :  { %1881 = vmatprep.subr.mxu0 %v4187_v30  ;;  %3262 = vmatprep.subr.mxu1 %v4775_v6 }
 0x8a7   :  { %1882 = vmatpush1.msra.mxu0 %v4193_v33  ;;  %3263 = vmatpush3.msra.mxu1 %v4189_v31 }
 0x8a8   :  { %1883 = vmatprep.subr.mxu0 %v4197_v35  ;;  %3264 = vmatprep.subr.mxu1 %v4775_v6 }
 0x8a9   :  { %1884 = vmatpush1.msra.mxu0 %v4203_v54  ;;  %3265 = vmatpush3.msra.mxu1 %v4199_v36 }
 0x8aa   :  { %1885 = vmatprep.subr.mxu0 %v4207_v55  ;;  %3266 = vmatprep.subr.mxu1 %v4775_v6 }
 0x8ab   :  { %1886 = vmatpush1.msra.mxu0 %v4213_v57  ;;  %3267 = vmatpush3.msra.mxu1 %v4209_v56 }
 0x8ac   :  { %1887 = vmatprep.subr.mxu0 %v4217_v59  ;;  %3268 = vmatprep.subr.mxu1 %v4775_v6 }
 0x8ad   :  { %1888 = vmatpush1.msra.mxu0 %v4223_v63  ;;  %3269 = vmatpush3.msra.mxu1 %v4219_v62 }
 0x8ae   :  { %1889 = vmatprep.subr.mxu0 %v4227_v0  ;;  %3270 = vmatprep.subr.mxu1 %v4775_v6 }
 0x8af   :  { %1890 = vmatpush1.msra.mxu0 %v4233_v18  ;;  %3271 = vmatpush3.msra.mxu1 %v4229_v3 }
 0x8b0   :  { %1891 = vmatprep.subr.mxu0 %v4237_v14  ;;  %3272 = vmatprep.subr.mxu1 %v4775_v6 }
 0x8b1   :  { %1892 = vmatpush1.msra.mxu0 %v4243_v21  ;;  %3273 = vmatpush3.msra.mxu1 %v4239_v19 }
 0x8b2   :  { %1893 = vmatprep.subr.mxu0 %v4247_v20  ;;  %3274 = vmatprep.subr.mxu1 %v4775_v6 }
 0x8b3   :  { %1894 = vmatpush1.msra.mxu0 %v4253_v8  ;;  %3275 = vmatpush3.msra.mxu1 %v4249_v58 }
 0x8b4   :  { %1895 = vmatprep.subr.mxu0 %v4257_v7  ;;  %3276 = vmatprep.subr.mxu1 %v4775_v6 }
 0x8b5   :  { %1896 = vmatpush1.msra.mxu0 %v4263_v11  ;;  %3277 = vmatpush3.msra.mxu1 %v4259_v9 }
 0x8b6   :  { %1897 = vmatprep.subr.mxu0 %v4267_v13  ;;  %3278 = vmatprep.subr.mxu1 %v4775_v6 }
 0x8b7   :  { %1898 = vmatpush1.msra.mxu0 %v4273_v12  ;;  %3279 = vmatpush3.msra.mxu1 %v4269_v15 }
 0x8b8   :  { %1899 = vmatprep.subr.mxu0 %v4844_v17  ;;  %3280 = vmatprep.subr.mxu1 %v4775_v6 }
 0x8b9   :  { %1900 = vmatpush1.msra.mxu0 %v4845_v34  ;;  %3281 = vmatpush3.msra.mxu1 %v4846_v37 }
 0x8ba   :  { %1901 = vmatprep.subr.mxu0 %v4287_v22  ;;  %3282 = vmatprep.subr.mxu1 %v4775_v6 }
 0x8bb   :  { %1902 = vmatpush1.msra.mxu0 %v4847_v40  ;;  %3283 = vmatpush3.msra.mxu1 %v4848_v49 }
 0x8bc   :  { %1903 = vmatprep.subr.mxu0 %v4849_v51  ;;  %3284 = vmatprep.subr.mxu1 %v4775_v6 }
 0x8bd   :  { %1904 = vmatpush1.msra.mxu0 %v4850_v24  ;;  %3285 = vmatpush3.msra.mxu1 %v4851_v25 }
 0x8be   :  { %1905 = vmatprep.subr.mxu0 %v4852_v61  ;;  %3286 = vmatprep.subr.mxu1 %v4775_v6 }
 0x8bf   :  { %1906 = vmatpush1.msra.mxu0 %v4313_v5  ;;  %3287 = vmatpush3.msra.mxu1 %v4853_v16 }
 0x8c0   :  { %3288 = vmatprep.subr.mxu1 %v4775_v6  ;;  %1907 = vmatprep.subr.mxu0 %v4324_v23 }
 0x8c1   :  { %1908 = vmatpush1.msra.mxu0 %v4327_v4  ;;  %1941 = vmatprep.mubr.f32.mxu0 %v4775_v6 }
 0x8c2   :  { %3289 = vmatpush3.msra.mxu1 %v4329_v1  ;;  %3290 = vmatprep.mubr.msk.f32.mxu1 %vm3578_vm3, %v4775_v6 }
 0x8c3   :  { %2093 = vmatprep.subr.mxu0 %v4100_v38  ;;  %2164 = vmatprep.subr.mxu1 %v4102_v39  ;;  %v4857_v38 = vld [vmem:[#allocation36_spill] sm:$0xff]  ;;  %v4858_v39 = vld [vmem:[#allocation19_spill] sm:$0xff] }
 0x962   :  { %v1813_v60 = vpop.f32.mrf.mxu1 }
 0x964   :  { %v1815_v10 = vpop.f32.mrf.mxu1 }
 0x965   :  { %v1818_v50 = vadd.f32 %v4808_v32, %v1815_v10  ;;  %v4860_v32 = vld [vmem:[#allocation20_spill] sm:$0xff] }
 0x966   :  { %v4864_v10 = vld [vmem:[#allocation24_spill] sm:$0xff] }
 0x967   :  { %1820 = vst [vmem:[#allocation12 + $0x20] sm:$0xff] %v1818_v50  ;;  %v1823_v53 = vsel %vm84_vm0, %v1818_v50, -inf  ;;  %v4865_v50 = vld [vmem:[#allocation27_spill] sm:$0xff] }
 0x968   :  { %1824 = vmax.xlane.f32.xlu0 %v1823_v53 }
 0x9f1   :  { %v1825_v46 = vpop.xlane.xlu0 %1824 }
 0x9f2   :  { %vm1826_vm12 = vcmp.eq.f32.partialorder %v1823_v53, %v1825_v46  ;;  %v4866_v53 = vld [vmem:[#allocation26_spill] sm:$0xff]  ;;  %v4867_v46 = vld [vmem:[#allocation29_spill] sm:$0xff] }
 0x9f3   :  { %2978 = vmatmul.mubr.msk.f32.vlgmr.msra.gmra.mxu0 %vm1826_vm12, %v4855_v48  ;;  %3291 = vmatmul.mubr.msk.f32.vlgmr.msra.gmra.mxu1 %vm1826_vm12, %v4855_v48 }
 0x9f4   :  { %2094 = vmatpush1.msra.mxu0 %v4856_v45  ;;  %2165 = vmatpush1.msra.mxu1 %v4857_v38  ;;  %v4868_v45 = vld [vmem:[#allocation28_spill] sm:$0xff]  ;;  %v4869_v38 = vld [vmem:[#allocation30_spill] sm:$0xff] }
 0x9f5   :  { %2095 = vmatprep.subr.mxu0 %v4858_v39  ;;  %2166 = vmatprep.subr.mxu1 %v4859_v44  ;;  %v4870_v39 = vld [vmem:[#allocation31_spill] sm:$0xff]  ;;  %v1742_v44 = vpop.f32.mrf.mxu0 }
 0x9f6   :  { %2096 = vmatpush1.msra.mxu0 %v4860_v32  ;;  %2167 = vmatpush1.msra.mxu1 %v4861_v43  ;;  %v2023_v32 = vstv %s2022_s12 }
 0x9f7   :  { %2097 = vmatprep.subr.mxu0 %v4862_v42  ;;  %2168 = vmatprep.subr.mxu1 %v4863_v47  ;;  %v1744_v43 = vpop.f32.mrf.mxu0  ;;  %v2019_v42 = vld [vmem:[#allocation4 + $0x78] sm:$0xff]  ;;  %vm4463_vm13 = vcmp.eq.s32.totalorder %v2023_v32, 1 }
 0x9f8   :  { %2098 = vmatpush1.msra.mxu0 %v4864_v10  ;;  %2169 = vmatpush1.msra.mxu1 %v4865_v50 }
 0x9f9   :  { %2099 = vmatprep.subr.mxu0 %v4866_v53  ;;  %2170 = vmatprep.subr.mxu1 %v4867_v46 }
 0x9fa   :  { %2100 = vmatpush1.msra.mxu0 %v4868_v45  ;;  %2133 = vmatprep.mubr.f32.mxu0 %v4775_v6 }
 0x9fb   :  { %2171 = vmatpush1.msra.mxu1 %v4869_v38  ;;  %2204 = vmatprep.mubr.f32.mxu1 %v4775_v6  ;;  %v2020_v38 = vld [vmem:[#allocation4 + $0x80] sm:$0xff] }
 0x9fc   :  { %2270 = vmatprep.subr.mxu0 %v4870_v39  ;;  %3293 = vmatprep.subr.mxu1 %v4775_v6 }
 0xab3   :  { %v1943_v10 = vpop.f32.mrf.mxu0  ;;  %v2014_v50 = vpop.f32.mrf.mxu1 }
 0xab4   :  { %v2025_v53 = vsel %vm4463_vm13, %v2019_v42, %v1943_v10  ;;  %v2021_v10 = vld [vmem:[#allocation4 + $0x88] sm:$0xff] }
 0xab5   :  { %v2028_v46 = vadd.f32 %v2025_v53, %v1742_v44  ;;  %v1945_v45 = vpop.f32.mrf.mxu0  ;;  %v3292_v39 = vpop.f32.mrf.mxu1  ;;  %v4474_v44 = vld [vmem:[%s4663_s5] ss:$0 sm:$0xff] }
 0xab6   :  { %v2026_v52 = vsel %vm4463_vm13, %v2020_v38, %v1945_v45  ;;  %v2042_v42 = vadd.f32 %v4474_v44, %v1813_v60 }
 0xab7   :  { %v2980_v48 = vmul.f32 -1.442695, %v2028_v46  ;;  %v2035_v1 = vadd.f32 %v2026_v52, %v1744_v43 }
 0xab9   :  { %3418 = vpow2.f32 %v2980_v48  ;;  %v2981_v4 = vmul.f32 -1.442695, %v2035_v1  ;;  %v2027_v1 = vsel %vm4463_vm13, %v2021_v10, %v2014_v50 }
 0xabb   :  { %3420 = vpow2.f32 %v2981_v4 }
 0xac6   :  { %v3419_v32 = vpop.eup %3418 }
 0xac7   :  { %v2032_v23 = vadd.f32 1.0, %v3419_v32 }
 0xac8   :  { %v3421_v16 = vpop.eup %3420 }
 0xac9   :  { %3422 = vrcp.f32 %v2032_v23  ;;  %v2039_v5 = vadd.f32 1.0, %v3421_v16 }
 0xacb   :  { %3424 = vrcp.f32 %v2039_v5  ;;  %v2412_v5 = vld [vmem:[#allocation4 + $0x90] sm:$0xff] }
 0xad6   :  { %v3423_v53 = vpop.eup %3422 }
 0xad7   :  { %v2043_v46 = vmul.f32 %v3423_v53, %v2042_v42  ;;  %v2414_v42 = vld [vmem:[#allocation4 + $0xa0] sm:$0xff] }
 0xad8   :  { %v3425_v52 = vpop.eup %3424 }
 0xad9   :  { %v2044_v4 = vadd.f32 %v2043_v46, %v2027_v1  ;;  %v2046_v23 = vsub.f32 1.0, %v3425_v52  ;;  %v2048_v43 = vmul.f32 %v3425_v52, %v4367_v41 }
 0xadb   :  { %3426 = vtanh.f32 %v2044_v4 }
 0xae8   :  { %v3427_v48 = vpop.eup %3426 }
 0xae9   :  { %v2047_v16 = vmul.f32 %v3427_v48, %v2046_v23 }
 0xaeb   :  { %v4480_v45 = vadd.f32 %v2048_v43, %v2047_v16 }
 0xaed   :  { %2982 = vmatmul.mubr.msk.f32.vlgmr.msra.gmra.mxu0 %vm120_vm2, %v4480_v45  ;;  %2983 = vmatmul.mubr.msk.f32.vlgmr.msra.gmra.mxu1 %vm120_vm2, %v4480_v45 }
 0xaee   :  { %2271 = vmatpush1.msra.mxu0 %v4173_v26  ;;  %3294 = vmatpush3.msra.mxu1 %v4175_v27  ;;  %v4873_v26 = vld [vmem:[#allocation44_spill] sm:$0xff]  ;;  %v4874_v27 = vld [vmem:[#allocation34_spill] sm:$0xff] }
 0xaef   :  { %2272 = vmatprep.subr.mxu0 %v4179_v2  ;;  %3295 = vmatprep.subr.mxu1 %v4775_v6  ;;  %v4875_v2 = vld [vmem:[#allocation45_spill] sm:$0xff] }
 0xaf0   :  { %2273 = vmatpush1.msra.mxu0 %v4181_v28  ;;  %3296 = vmatpush3.msra.mxu1 %v4183_v29  ;;  %v4876_v28 = vld [vmem:[#allocation46_spill] sm:$0xff]  ;;  %v4877_v29 = vld [vmem:[#allocation47_spill] sm:$0xff] }
 0xaf1   :  { %2274 = vmatprep.subr.mxu0 %v4187_v30  ;;  %3297 = vmatprep.subr.mxu1 %v4775_v6 }
 0xaf2   :  { %2275 = vmatpush1.msra.mxu0 %v4193_v33  ;;  %3298 = vmatpush3.msra.mxu1 %v4189_v31  ;;  %v4556_v33 = vld [vmem:[%s4664_s6] ss:$0 sm:$0xff]  ;;  %s2984_s6 = sld [smem:[#allocation3 + $0x6]] }
 0xaf3   :  { %2276 = vmatprep.subr.mxu0 %v4197_v35  ;;  %3299 = vmatprep.subr.mxu1 %v4775_v6 }
 0xaf4   :  { %2277 = vmatpush1.msra.mxu0 %v4203_v54  ;;  %3300 = vmatpush3.msra.mxu1 %v4199_v36 }
 0xaf5   :  { %2278 = vmatprep.subr.mxu0 %v4207_v55  ;;  %3301 = vmatprep.subr.mxu1 %v4775_v6 }
 0xaf6   :  { %2279 = vmatpush1.msra.mxu0 %v4213_v57  ;;  %3302 = vmatpush3.msra.mxu1 %v4209_v56  ;;  %v4879_v56 = vmov 1.0   ;;  %v2456_v57 = vld [vmem:[#allocation10 + $0x68] sm:$0xff] }
 0xaf7   :  { %2280 = vmatprep.subr.mxu0 %v4217_v59  ;;  %3303 = vmatprep.subr.mxu1 %v4775_v6  ;;  %v4565_v59 = vld [vmem:[#allocation10 + $0x78] sm:$0xff] }
 0xaf8   :  { %2281 = vmatpush1.msra.mxu0 %v4223_v63  ;;  %3304 = vmatpush3.msra.mxu1 %v4219_v62  ;;  %v2455_v62 = vld [vmem:[#allocation10 + $0x60] sm:$0xff]  ;;  %v4568_v63 = vld [vmem:[#allocation10 + $0x70] sm:$0xff]  ;;  %p2215_p11 = scmp.ne.s32.totalorder %s2984_s6, 0 }
 0xaf9   :  { %2282 = vmatprep.subr.mxu0 %v4227_v0  ;;  %3305 = vmatprep.subr.mxu1 %v4775_v6  ;;  %v2452_v0 = vld [vmem:[#allocation10 + $0x48] sm:$0xff] }
 0xafa   :  { %2283 = vmatpush1.msra.mxu0 %v4233_v18  ;;  %3306 = vmatpush3.msra.mxu1 %v4229_v3  ;;  %v4570_v3 = vld [vmem:[#allocation10 + $0x58] sm:$0xff]  ;;  %v2451_v18 = vld [vmem:[#allocation10 + $0x40] sm:$0xff]  ;;  %s2415_s16 = scalar_select %p2215_p11, 1, 0 }
 0xafb   :  { %2284 = vmatprep.subr.mxu0 %v4237_v14  ;;  %3307 = vmatprep.subr.mxu1 %v4775_v6  ;;  %v4573_v14 = vld [vmem:[#allocation10 + $0x50] sm:$0xff] }
 0xafc   :  { %2285 = vmatpush1.msra.mxu0 %v4243_v21  ;;  %3308 = vmatpush3.msra.mxu1 %v4239_v19  ;;  %v2448_v19 = vld [vmem:[#allocation10 + $0x28] sm:$0xff]  ;;  %v4576_v21 = vld [vmem:[#allocation10 + $0x38] sm:$0xff] }
 0xafd   :  { %2286 = vmatprep.subr.mxu0 %v4247_v20  ;;  %3309 = vmatprep.subr.mxu1 %v4775_v6  ;;  %v2447_v20 = vld [vmem:[#allocation10 + $0x20] sm:$0xff] }
 0xafe   :  { %2287 = vmatpush1.msra.mxu0 %v4253_v8  ;;  %3310 = vmatpush3.msra.mxu1 %v4249_v58  ;;  %v4578_v58 = vld [vmem:[#allocation10 + $0x30] sm:$0xff]  ;;  %v2444_v8 = vld [vmem:[#allocation10 + $0x8] sm:$0xff] }
 0xaff   :  { %2288 = vmatprep.subr.mxu0 %v4257_v7  ;;  %3311 = vmatprep.subr.mxu1 %v4775_v6  ;;  %v4581_v7 = vld [vmem:[#allocation10 + $0x18] sm:$0xff] }
 0xb00   :  { %2289 = vmatpush1.msra.mxu0 %v4263_v11  ;;  %3312 = vmatpush3.msra.mxu1 %v4259_v9  ;;  %v2443_v9 = vld [vmem:[#allocation10] sm:$0xff]  ;;  %v4584_v11 = vld [vmem:[#allocation10 + $0x10] sm:$0xff] }
 0xb01   :  { %2290 = vmatprep.subr.mxu0 %v4267_v13  ;;  %3313 = vmatprep.subr.mxu1 %v4775_v6 }
 0xb02   :  { %2291 = vmatpush1.msra.mxu0 %v4273_v12  ;;  %3314 = vmatpush3.msra.mxu1 %v4269_v15  ;;  %v2416_v15 = vstv %s2415_s16 }
 0xb03   :  { %2292 = vmatprep.subr.mxu0 %v4844_v17  ;;  %3315 = vmatprep.subr.mxu1 %v4775_v6  ;;  %vm4590_vm15 = vcmp.eq.s32.totalorder %v2416_v15, 1  ;;  %v2642_v15 = vld [vmem:[#allocation7 + $0xd8] sm:$0xff] }
 0xb04   :  { %2293 = vmatpush1.msra.mxu0 %v4845_v34  ;;  %3316 = vmatpush3.msra.mxu1 %v4846_v37 }
 0xb05   :  { %2294 = vmatprep.subr.mxu0 %v4287_v22  ;;  %3317 = vmatprep.subr.mxu1 %v4775_v6  ;;  %v2639_v22 = vld [vmem:[#allocation7 + $0xc0] sm:$0xff] }
 0xb06   :  { %2295 = vmatpush1.msra.mxu0 %v4847_v40  ;;  %3318 = vmatpush3.msra.mxu1 %v4848_v49  ;;  %v2413_v49 = vld [vmem:[#allocation4 + $0x98] sm:$0xff] }
 0xb07   :  { %2296 = vmatprep.subr.mxu0 %v4849_v51  ;;  %3319 = vmatprep.subr.mxu1 %v4775_v6 }
 0xb08   :  { %2297 = vmatpush1.msra.mxu0 %v4850_v24  ;;  %3320 = vmatpush3.msra.mxu1 %v4851_v25 }
 0xb09   :  { %2298 = vmatprep.subr.mxu0 %v4852_v61  ;;  %3321 = vmatprep.subr.mxu1 %v4775_v6 }
 0xb0a   :  { %2299 = vmatpush1.msra.mxu0 %v4873_v26  ;;  %3322 = vmatpush3.msra.mxu1 %v4874_v27  ;;  %v2661_v26 = vld [vmem:[#allocation7 + $0x170] sm:$0xff]  ;;  %v2660_v27 = vld [vmem:[#allocation7 + $0x168] sm:$0xff] }
 0xb0b   :  { %3323 = vmatprep.subr.mxu1 %v4775_v6  ;;  %2300 = vmatprep.subr.mxu0 %v4875_v2  ;;  %v2662_v2 = vld [vmem:[#allocation7 + $0x178] sm:$0xff] }
 0xb0c   :  { %2301 = vmatpush1.msra.mxu0 %v4876_v28  ;;  %2334 = vmatprep.mubr.f32.mxu0 %v4775_v6  ;;  %v2658_v28 = vld [vmem:[#allocation7 + $0x158] sm:$0xff] }
 0xb0d   :  { %3324 = vmatpush3.msra.mxu1 %v4877_v29  ;;  %3325 = vmatprep.mubr.msk.f32.mxu1 %vm3578_vm3, %v4775_v6  ;;  %v2659_v29 = vld [vmem:[#allocation7 + $0x160] sm:$0xff] }
 0xb0e   :  { %2486 = vmatprep.subr.mxu0 %v2456_v57  ;;  %2557 = vmatprep.subr.mxu1 %v4565_v59  ;;  %v2651_v57 = vld [vmem:[#allocation7 + $0x120] sm:$0xff] }
 0xbad   :  { %v4551_v30 = vpop.f32.mrf.mxu1  ;;  %v2135_v13 = vpop.f32.mrf.mxu0 }
 0xbae   :  { %v2435_v32 = vadd.f32 %v4474_v44, %v4551_v30  ;;  %v2655_v30 = vld [vmem:[#allocation7 + $0x140] sm:$0xff] }
 0xbaf   :  { %v2208_v31 = vpop.f32.mrf.mxu1  ;;  %v2137_v12 = vpop.f32.mrf.mxu0 }
 0xbb0   :  { %v2211_v35 = vadd.f32 %v4556_v33, %v2208_v31  ;;  %v2656_v31 = vld [vmem:[#allocation7 + $0x148] sm:$0xff] }
 0xbb2   :  { %2213 = vst [vmem:[#allocation12 + $0x28] sm:$0xff] %v2211_v35  ;;  %v2216_v54 = vsel %vm84_vm0, %v2211_v35, -inf  ;;  %v2654_v35 = vld [vmem:[#allocation7 + $0x138] sm:$0xff] }
 0xbb3   :  { %2217 = vmax.xlane.f32.xlu1 %v2216_v54 }
 0xc3c   :  { %v2218_v55 = vpop.xlane.xlu1 %2217 }
 0xc3d   :  { %vm2219_vm14 = vcmp.eq.f32.partialorder %v2216_v54, %v2218_v55  ;;  %v2652_v54 = vld [vmem:[#allocation7 + $0x128] sm:$0xff]  ;;  %v2653_v55 = vld [vmem:[#allocation7 + $0x130] sm:$0xff] }
 0xc3e   :  { %2986 = vmatmul.mubr.msk.f32.vlgmr.msra.gmra.mxu0 %vm2219_vm14, %v4879_v56  ;;  %3326 = vmatmul.mubr.msk.f32.vlgmr.msra.gmra.mxu1 %vm2219_vm14, %v4879_v56 }
 0xc3f   :  { %2526 = vmatprep.mubr.f32.mxu0 %v4775_v6  ;;  %2597 = vmatprep.mubr.f32.mxu1 %v4775_v6 }
 0xc40   :  { %2487 = vmatpush1.msra.mxu0 %v2455_v62  ;;  %2558 = vmatpush1.msra.mxu1 %v4568_v63  ;;  %v2649_v62 = vld [vmem:[#allocation7 + $0x110] sm:$0xff] }
 0xc41   :  { %2488 = vmatprep.subr.mxu0 %v2452_v0  ;;  %2559 = vmatprep.subr.mxu1 %v4570_v3  ;;  %v2650_v0 = vld [vmem:[#allocation7 + $0x118] sm:$0xff] }
 0xc42   :  { %2489 = vmatpush1.msra.mxu0 %v2451_v18  ;;  %2560 = vmatpush1.msra.mxu1 %v4573_v14  ;;  %v2648_v18 = vld [vmem:[#allocation7 + $0x108] sm:$0xff] }
 0xc43   :  { %2490 = vmatprep.subr.mxu0 %v2448_v19  ;;  %2561 = vmatprep.subr.mxu1 %v4576_v21  ;;  %v2646_v19 = vld [vmem:[#allocation7 + $0xf8] sm:$0xff] }
 0xc44   :  { %2491 = vmatpush1.msra.mxu0 %v2447_v20  ;;  %2562 = vmatpush1.msra.mxu1 %v4578_v58  ;;  %v2647_v20 = vld [vmem:[#allocation7 + $0x100] sm:$0xff] }
 0xc45   :  { %2492 = vmatprep.subr.mxu0 %v2444_v8  ;;  %2563 = vmatprep.subr.mxu1 %v4581_v7  ;;  %v2645_v8 = vld [vmem:[#allocation7 + $0xf0] sm:$0xff] }
 0xc46   :  { %2493 = vmatpush1.msra.mxu0 %v2443_v9  ;;  %2564 = vmatpush1.msra.mxu1 %v4584_v11  ;;  %v2643_v9 = vld [vmem:[#allocation7 + $0xe0] sm:$0xff] }
 0xc47   :  { %3328 = vmatprep.subr.mxu1 %v4775_v6  ;;  %2663 = vmatprep.subr.mxu0 %v2661_v26  ;;  %v2615_v26 = vld [vmem:[#allocation7] sm:$0xff] }
 0xcfe   :  { %v2336_v41 = vpop.f32.mrf.mxu0  ;;  %v2407_v17 = vpop.f32.mrf.mxu1 }
 0xcff   :  { %v2418_v34 = vsel %vm4590_vm15, %v2412_v5, %v2336_v41  ;;  %v2420_v46 = vsel %vm4590_vm15, %v2414_v42, %v2407_v17  ;;  %v2641_v5 = vld [vmem:[#allocation7 + $0xd0] sm:$0xff]  ;;  %v2638_v17 = vld [vmem:[#allocation7 + $0xb8] sm:$0xff]  ;;  %v2623_v42 = vld [vmem:[#allocation7 + $0x40] sm:$0xff] }
 0xd00   :  { %v2421_v37 = vadd.f32 %v2418_v34, %v2135_v13  ;;  %v2338_v40 = vpop.f32.mrf.mxu0  ;;  %v3327_v51 = vpop.f32.mrf.mxu1  ;;  %v2644_v13 = vld [vmem:[#allocation7 + $0xe8] sm:$0xff]  ;;  %v2637_v41 = vld [vmem:[#allocation7 + $0xb0] sm:$0xff] }
 0xd01   :  { %v2419_v25 = vsel %vm4590_vm15, %v2413_v49, %v2338_v40  ;;  %v2636_v34 = vld [vmem:[#allocation7 + $0xa8] sm:$0xff]  ;;  %v2635_v40 = vld [vmem:[#allocation7 + $0xa0] sm:$0xff]  ;;  %v2633_v49 = vld [vmem:[#allocation7 + $0x90] sm:$0xff] }
 0xd02   :  { %v2988_v24 = vmul.f32 -1.442695, %v2421_v37  ;;  %v2428_v61 = vadd.f32 %v2419_v25, %v2137_v12  ;;  %v2640_v12 = vld [vmem:[#allocation7 + $0xc8] sm:$0xff]  ;;  %v2634_v37 = vld [vmem:[#allocation7 + $0x98] sm:$0xff]  ;;  %v2631_v51 = vld [vmem:[#allocation7 + $0x80] sm:$0xff] }
 0xd03   :  { %v2630_v25 = vld [vmem:[#allocation7 + $0x78] sm:$0xff] }
 0xd04   :  { %3428 = vpow2.f32 %v2988_v24  ;;  %v2989_v60 = vmul.f32 -1.442695, %v2428_v61  ;;  %v2632_v24 = vld [vmem:[#allocation7 + $0x88] sm:$0xff] }
 0xd05   :  { %v2628_v61 = vld [vmem:[#allocation7 + $0x68] sm:$0xff] }
 0xd06   :  { %3430 = vpow2.f32 %v2989_v60  ;;  %v2629_v60 = vld [vmem:[#allocation7 + $0x70] sm:$0xff] }
 0xd11   :  { %v3429_v47 = vpop.eup %3428 }
 0xd12   :  { %v2425_v50 = vadd.f32 1.0, %v3429_v47  ;;  %v2627_v47 = vld [vmem:[#allocation7 + $0x60] sm:$0xff] }
 0xd13   :  { %v3431_v38 = vpop.eup %3430 }
 0xd14   :  { %3432 = vrcp.f32 %v2425_v50  ;;  %v2432_v39 = vadd.f32 1.0, %v3431_v38  ;;  %v2625_v50 = vld [vmem:[#allocation7 + $0x50] sm:$0xff]  ;;  %v2626_v38 = vld [vmem:[#allocation7 + $0x58] sm:$0xff] }
 0xd16   :  { %3434 = vrcp.f32 %v2432_v39  ;;  %v2624_v39 = vld [vmem:[#allocation7 + $0x48] sm:$0xff] }
 0xd21   :  { %v3433_v10 = vpop.eup %3432 }
 0xd22   :  { %v2436_v53 = vmul.f32 %v3433_v10, %v2435_v32  ;;  %v2622_v32 = vld [vmem:[#allocation7 + $0x38] sm:$0xff]  ;;  %v2621_v10 = vld [vmem:[#allocation7 + $0x30] sm:$0xff] }
 0xd23   :  { %v3435_v4 = vpop.eup %3434 }
 0xd24   :  { %v2437_v1 = vadd.f32 %v2436_v53, %v2420_v46  ;;  %v2439_v52 = vsub.f32 1.0, %v3435_v4  ;;  %v2441_v16 = vmul.f32 %v3435_v4, %v4480_v45  ;;  %v2657_v45 = vld [vmem:[#allocation7 + $0x150] sm:$0xff]  ;;  %v2619_v53 = vld [vmem:[#allocation7 + $0x20] sm:$0xff]  ;;  %v2620_v46 = vld [vmem:[#allocation7 + $0x28] sm:$0xff] }
 0xd26   :  { %3436 = vtanh.f32 %v2437_v1  ;;  %v2618_v1 = vld [vmem:[#allocation7 + $0x18] sm:$0xff] }
 0xd33   :  { %v3437_v23 = vpop.eup %3436 }
 0xd34   :  { %v2440_v48 = vmul.f32 %v3437_v23, %v2439_v52 }
 0xd36   :  { %v4603_v43 = vadd.f32 %v2441_v16, %v2440_v48  ;;  %v2616_v16 = vld [vmem:[#allocation7 + $0x8] sm:$0xff] }
 0xd38   :  { %2990 = vmatmul.mubr.msk.f32.vlgmr.msra.gmra.mxu0 %vm120_vm2, %v4603_v43  ;;  %2991 = vmatmul.mubr.msk.f32.vlgmr.msra.gmra.mxu1 %vm120_vm2, %v4603_v43 }
 0xd39   :  { %2727 = vmatprep.mubr.f32.mxu0 %v4775_v6  ;;  %3360 = vmatprep.mubr.msk.f32.mxu1 %vm3578_vm3, %v4775_v6 }
 0xd3a   :  { %3329 = vmatpush3.msra.mxu1 %v2662_v2  ;;  %2664 = vmatpush1.msra.mxu0 %v2660_v27  ;;  %v2617_v27 = vld [vmem:[#allocation7 + $0x10] sm:$0xff] }
 0xd3b   :  { %3330 = vmatprep.subr.mxu1 %v4775_v6  ;;  %2665 = vmatprep.subr.mxu0 %v2658_v28  ;;  %v2806_v28 = vld [vmem:[#allocation4 + $0xb0] sm:$0xff] }
 0xd3c   :  { %3331 = vmatpush3.msra.mxu1 %v2659_v29  ;;  %2666 = vmatpush1.msra.mxu0 %v2657_v45 }
 0xd3d   :  { %3332 = vmatprep.subr.mxu1 %v4775_v6  ;;  %2667 = vmatprep.subr.mxu0 %v2655_v30 }
 0xd3e   :  { %3333 = vmatpush3.msra.mxu1 %v2656_v31  ;;  %2668 = vmatpush1.msra.mxu0 %v2654_v35 }
 0xd3f   :  { %3334 = vmatprep.subr.mxu1 %v4775_v6  ;;  %2669 = vmatprep.subr.mxu0 %v2652_v54 }
 0xd40   :  { %3335 = vmatpush3.msra.mxu1 %v2653_v55  ;;  %2670 = vmatpush1.msra.mxu0 %v2651_v57 }
 0xd41   :  { %3336 = vmatprep.subr.mxu1 %v4775_v6  ;;  %2671 = vmatprep.subr.mxu0 %v2649_v62 }
 0xd42   :  { %3337 = vmatpush3.msra.mxu1 %v2650_v0  ;;  %2672 = vmatpush1.msra.mxu0 %v2648_v18  ;;  %v2807_v0 = vld [vmem:[#allocation4 + $0xb8] sm:$0xff] }
 0xd43   :  { %3338 = vmatprep.subr.mxu1 %v4775_v6  ;;  %2673 = vmatprep.subr.mxu0 %v2646_v19 }
 0xd44   :  { %3339 = vmatpush3.msra.mxu1 %v2647_v20  ;;  %2674 = vmatpush1.msra.mxu0 %v2645_v8 }
 0xd45   :  { %3340 = vmatprep.subr.mxu1 %v4775_v6  ;;  %2675 = vmatprep.subr.mxu0 %v2643_v9 }
 0xd46   :  { %3341 = vmatpush3.msra.mxu1 %v2644_v13  ;;  %2676 = vmatpush1.msra.mxu0 %v2642_v15 }
 0xd47   :  { %3342 = vmatprep.subr.mxu1 %v4775_v6  ;;  %2677 = vmatprep.subr.mxu0 %v2640_v12 }
 0xd48   :  { %3343 = vmatpush3.msra.mxu1 %v2641_v5  ;;  %2678 = vmatpush1.msra.mxu0 %v2639_v22 }
 0xd49   :  { %3344 = vmatprep.subr.mxu1 %v4775_v6  ;;  %2679 = vmatprep.subr.mxu0 %v2637_v41 }
 0xd4a   :  { %3345 = vmatpush3.msra.mxu1 %v2638_v17  ;;  %2680 = vmatpush1.msra.mxu0 %v2636_v34 }
 0xd4b   :  { %3346 = vmatprep.subr.mxu1 %v4775_v6  ;;  %2681 = vmatprep.subr.mxu0 %v2634_v37 }
 0xd4c   :  { %3347 = vmatpush3.msra.mxu1 %v2635_v40  ;;  %2682 = vmatpush1.msra.mxu0 %v2633_v49 }
 0xd4d   :  { %3348 = vmatprep.subr.mxu1 %v4775_v6  ;;  %2683 = vmatprep.subr.mxu0 %v2631_v51 }
 0xd4e   :  { %3349 = vmatpush3.msra.mxu1 %v2632_v24  ;;  %2684 = vmatpush1.msra.mxu0 %v2630_v25 }
 0xd4f   :  { %3350 = vmatprep.subr.mxu1 %v4775_v6  ;;  %2685 = vmatprep.subr.mxu0 %v2628_v61 }
 0xd50   :  { %3351 = vmatpush3.msra.mxu1 %v2629_v60  ;;  %2686 = vmatpush1.msra.mxu0 %v2627_v47 }
 0xd51   :  { %3352 = vmatprep.subr.mxu1 %v4775_v6  ;;  %2687 = vmatprep.subr.mxu0 %v2625_v50 }
 0xd52   :  { %3353 = vmatpush3.msra.mxu1 %v2626_v38  ;;  %2688 = vmatpush1.msra.mxu0 %v2624_v39 }
 0xd53   :  { %3354 = vmatprep.subr.mxu1 %v4775_v6  ;;  %2689 = vmatprep.subr.mxu0 %v2622_v32 }
 0xd54   :  { %3355 = vmatpush3.msra.mxu1 %v2623_v42  ;;  %2690 = vmatpush1.msra.mxu0 %v2621_v10 }
 0xd55   :  { %3356 = vmatprep.subr.mxu1 %v4775_v6  ;;  %2691 = vmatprep.subr.mxu0 %v2619_v53 }
 0xd56   :  { %3357 = vmatpush3.msra.mxu1 %v2620_v46  ;;  %2692 = vmatpush1.msra.mxu0 %v2618_v1 }
 0xd57   :  { %3358 = vmatprep.subr.mxu1 %v4775_v6  ;;  %2693 = vmatprep.subr.mxu0 %v2616_v16 }
 0xd58   :  { %2694 = vmatpush1.msra.mxu0 %v2615_v26  ;;  %3359 = vmatpush3.msra.mxu1 %v2617_v27 }
 0xd59   :  { %2871 = vmatprep.subr.mxu0 %v4565_v59 }
 0xdf8   :  { %v2599_v4 = vpop.f32.mrf.mxu1  ;;  %v2528_v36 = vpop.f32.mrf.mxu0 }
 0xdf9   :  { %v2828_v62 = vadd.f32 %v4474_v44, %v2599_v4 }
 0xdfa   :  { %v2601_v52 = vpop.f32.mrf.mxu1  ;;  %v2530_v59 = vpop.f32.mrf.mxu0 }
 0xdfb   :  { %v2604_v23 = vadd.f32 %v4556_v33, %v2601_v52 }
 0xdfd   :  { %2606 = vst [vmem:[#allocation12 + $0x30] sm:$0xff] %v2604_v23  ;;  %v2609_v48 = vsel %vm84_vm0, %v2604_v23, -inf }
 0xdfe   :  { %2610 = vmax.xlane.f32.xlu0 %v2609_v48 }
 0xe87   :  { %v2611_v2 = vpop.xlane.xlu0 %2610 }
 0xe88   :  { %vm2612_vm1 = vcmp.eq.f32.partialorder %v2609_v48, %v2611_v2 }
 0xe89   :  { %2994 = vmatmul.mubr.msk.f32.vlgmr.msra.gmra.mxu0 %vm2612_vm1, %v4879_v56  ;;  %3361 = vmatmul.mubr.msk.f32.vlgmr.msra.gmra.mxu1 %vm2612_vm1, %v4879_v56  ;;  %v2809_v56 = vstv %s2808_s18 }
 0xe8a   :  { %2872 = vmatpush1.msra.mxu0 %v4568_v63  ;;  %2911 = vmatprep.mubr.f32.mxu0 %v4775_v6  ;;  %v2805_v63 = vld [vmem:[#allocation4 + $0xa8] sm:$0xff]  ;;  %vm4641_vm0 = vcmp.eq.s32.totalorder %v2809_v56, 1 }
 0xe8b   :  { %2873 = vmatprep.subr.mxu0 %v4570_v3 }
 0xe8c   :  { %2874 = vmatpush1.msra.mxu0 %v4573_v14 }
 0xe8d   :  { %2875 = vmatprep.subr.mxu0 %v4576_v21 }
 0xe8e   :  { %2876 = vmatpush1.msra.mxu0 %v4578_v58 }
 0xe8f   :  { %2877 = vmatprep.subr.mxu0 %v4581_v7 }
 0xe90   :  { %2878 = vmatpush1.msra.mxu0 %v4584_v11 }
 0xf49   :  { %v2729_v3 = vpop.f32.mrf.mxu0  ;;  %v2800_v14 = vpop.f32.mrf.mxu1 }
 0xf4a   :  { %v2811_v21 = vsel %vm4641_vm0, %v2805_v63, %v2729_v3  ;;  %v2813_v20 = vsel %vm4641_vm0, %v2807_v0, %v2800_v14 }
 0xf4b   :  { %v2814_v58 = vadd.f32 %v2811_v21, %v2528_v36  ;;  %v2731_v7 = vpop.f32.mrf.mxu0  ;;  %v3362_v11 = vpop.f32.mrf.mxu1 }
 0xf4c   :  { %v2812_v29 = vsel %vm4641_vm0, %v2806_v28, %v2731_v7 }
 0xf4d   :  { %v2996_v45 = vmul.f32 -1.442695, %v2814_v58  ;;  %v2821_v30 = vadd.f32 %v2812_v29, %v2530_v59 }
 0xf4f   :  { %3438 = vpow2.f32 %v2996_v45  ;;  %v2997_v31 = vmul.f32 -1.442695, %v2821_v30 }
 0xf51   :  { %3440 = vpow2.f32 %v2997_v31 }
 0xf5c   :  { %v3439_v35 = vpop.eup %3438 }
 0xf5d   :  { %v2818_v54 = vadd.f32 1.0, %v3439_v35 }
 0xf5e   :  { %v3441_v55 = vpop.eup %3440 }
 0xf5f   :  { %3442 = vrcp.f32 %v2818_v54  ;;  %v2825_v57 = vadd.f32 1.0, %v3441_v55 }
 0xf61   :  { %3444 = vrcp.f32 %v2825_v57 }
 0xf6c   :  { %v3443_v18 = vpop.eup %3442 }
 0xf6d   :  { %v2829_v19 = vmul.f32 %v3443_v18, %v2828_v62 }
 0xf6e   :  { %v3445_v9 = vpop.eup %3444 }
 0xf6f   :  { %v2830_v8 = vadd.f32 %v2829_v19, %v2813_v20  ;;  %v2832_v13 = vsub.f32 1.0, %v3445_v9  ;;  %v2834_v5 = vmul.f32 %v3445_v9, %v4603_v43 }
 0xf71   :  { %3446 = vtanh.f32 %v2830_v8 }
 0xf7e   :  { %v3447_v15 = vpop.eup %3446 }
 0xf7f   :  { %v2833_v12 = vmul.f32 %v3447_v15, %v2832_v13 }
 0xf81   :  { %v2835_v22 = vadd.f32 %v2834_v5, %v2833_v12 }
 0xf83   :  { %2998 = vmatmul.mubr.msk.f32.vlgmr.msra.gmra.mxu0 %vm120_vm2, %v2835_v22 }
0x1043   :  { %v2913_v44 = vpop.f32.mrf.mxu0 }
0x1045   :  { %v2914_v41 = vpop.f32.mrf.mxu0 }
0x1046   :  { %v2917_v17 = vadd.f32 %v4556_v33, %v2914_v41 }
0x1048   :  { %2919 = vst [vmem:[#allocation12 + $0x38] sm:$0xff] %v2917_v17 }
0x1049   :  { %3549 = shalt.err (!%p3546_p3)
}
0x104a   :  { %s3581_s21 = smov 128   ;;  %s3582_s1 = smov 8  }
0x104b   :  { %2931 = dma.vmem_to_hbm [thread:$0]  %s2926_s2, 1024, %s4665_s7, [#allocation6], %s3581_s21, %s3581_s21, %s3582_s1  }
0x104c   :  { %3566 = dma.done.wait [#allocation6], 1024  }
0x104d   :  { %3567 = vsyncadd [#allocation6], 4294966272 }
0x104e   :  { %2935 = vsyncpa [#allocation5], 1 }
0x104f   :  { %2936 = vsyncpa [#allocation8], 1 }
0x1050   :  { %2937 = vsyncpa [#allocation11], 1 }
0x1051   :  { %2938 = vsyncpa [#allocation6], 1 }

</bundles_post_ra>
